<compile_context>
chip_gen: v7x
topology: tpu7x:2x2x1
jax: 0.10.0
libtpu: 0.0.40
codegen_flags: <defaults>
</compile_context>

<pallas_src>
import functools
import math

import jax
import jax.numpy as jnp
from jax.experimental import pallas as pl
from jax.experimental.pallas import tpu as pltpu


def decoder_layers_kernel(x_ref, mask_ref, wqkv_ref, bqkv_ref, wo_ref,
                          w1_ref, bb1_ref, w2_ref, vecs_ref, out_ref,
                          *, num_heads, num_layers):
    N, D = x_ref.shape                      # N = B*S flat rows
    hd = D // num_heads
    scale = 1.0 / math.sqrt(hd)
    mask = mask_ref[...]                    # (N, N) block-diagonal additive mask

    # Per-head column selectors (hoisted out of the layer loop; pure VPU work).
    col = jax.lax.broadcasted_iota(jnp.int32, (1, D), 1)
    head_sel = [
        jnp.where((col >= h * hd) & (col < (h + 1) * hd), 1.0, 0.0).astype(jnp.float32)
        for h in range(num_heads)
    ]

    h_act = x_ref[...]                      # (N, D) resident activation
    for l in range(num_layers):             # static unroll; weights VMEM-resident
        wqkv = wqkv_ref[l]                  # (D, 3D)
        bqkv = bqkv_ref[l]                  # (1, 3D)
        wo = wo_ref[l]                      # (D, D)
        w1 = w1_ref[l]                      # (D, FF)
        b1 = bb1_ref[l]                     # (1, FF)
        w2 = w2_ref[l]                      # (FF, D)
        bo = vecs_ref[l, 0:1, :]            # (1, D)
        g1 = vecs_ref[l, 1:2, :]
        be1 = vecs_ref[l, 2:3, :]
        b2 = vecs_ref[l, 3:4, :]
        g2 = vecs_ref[l, 4:5, :]
        be2 = vecs_ref[l, 5:6, :]

        # ---- fused QKV projection: one MXU call ----
        qkv = jnp.dot(h_act, wqkv, preferred_element_type=jnp.float32) + bqkv  # (N, 3D)
        q = qkv[:, 0:D]
        k = qkv[:, D:2 * D]
        v = qkv[:, 2 * D:3 * D]

        # ---- multi-head self-attention (batch handled via block-diagonal mask) ----
        # Per head: zero the off-head columns of q (and v) with a selector mask so
        # the full-width matmul contracts only head-h columns; head contexts land
        # directly in their output column block -> no slices of activations, no concat.
        ctx = jnp.zeros((N, D), jnp.float32)
        for sel in head_sel:
            s = jnp.einsum('nd,md->nm', q * sel, k,
                           preferred_element_type=jnp.float32) * scale + mask
            m = jnp.max(s, axis=-1, keepdims=True)
            p = jnp.exp(s - m)
            p = p * pl.reciprocal(jnp.sum(p, axis=-1, keepdims=True), approx=True)
            ctx = ctx + jnp.dot(p, v * sel, preferred_element_type=jnp.float32)
        attn = jnp.dot(ctx, wo, preferred_element_type=jnp.float32) + bo

        # ---- residual + LayerNorm 1 (dropout1 = identity in eval) ----
        y = h_act + attn
        mu = jnp.mean(y, axis=-1, keepdims=True)
        var = jnp.mean((y - mu) ** 2, axis=-1, keepdims=True)
        y = (y - mu) * jax.lax.rsqrt(var + 1e-5) * g1 + be1

        # ---- feed-forward: Linear -> ReLU -> Linear ----
        f = jnp.dot(y, w1, preferred_element_type=jnp.float32) + b1
        f = jnp.maximum(f, 0.0)
        f = jnp.dot(f, w2, preferred_element_type=jnp.float32) + b2

        # ---- residual + LayerNorm 2 (dropout2 = identity in eval) ----
        z = y + f
        mu2 = jnp.mean(z, axis=-1, keepdims=True)
        var2 = jnp.mean((z - mu2) ** 2, axis=-1, keepdims=True)
        h_act = (z - mu2) * jax.lax.rsqrt(var2 + 1e-5) * g2 + be2

    out_ref[...] = h_act.astype(out_ref.dtype)   # single flat store


def decoder_layers_forward(x, mask, layer_params, num_heads):
    """x: (B, S, D) float32; mask: (S, S) additive float attention mask."""
    B, S, D = x.shape
    L = len(layer_params)
    FF = layer_params[0]["w1"].shape[1]
    N = B * S

    # --- pack parameters: stack layers, fuse QKV, pack small vectors into one slab ---
    wqkv = jnp.stack([jnp.concatenate([p["wq"], p["wk"], p["wv"]], axis=1)
                      for p in layer_params])                                   # (L, D, 3D)
    bqkv = jnp.stack([jnp.concatenate([p["bq"], p["bk"], p["bv"]], axis=1)
                      for p in layer_params])                                   # (L, 1, 3D)
    wo = jnp.stack([p["wo"] for p in layer_params])                             # (L, D, D)
    w1 = jnp.stack([p["w1"] for p in layer_params])                             # (L, D, FF)
    bb1 = jnp.stack([p["bb1"] for p in layer_params])                           # (L, 1, FF)
    w2 = jnp.stack([p["w2"] for p in layer_params])                             # (L, FF, D)
    vecs = jnp.stack([jnp.concatenate(
        [p["bo"], p["g1"], p["be1"], p["bb2"], p["g2"], p["be2"]], axis=0)
        for p in layer_params])                                                 # (L, 6, D)

    # --- block-diagonal additive mask so all batch elements share one softmax ---
    big_mask = jnp.full((N, N), -1e9, jnp.float32)
    for b in range(B):
        big_mask = big_mask.at[b * S:(b + 1) * S, b * S:(b + 1) * S].set(mask)

    xf = x.reshape(N, D)

    def full(shape):
        return pl.BlockSpec(shape, lambda i, nd=len(shape): (0,) * nd)

    kern = functools.partial(decoder_layers_kernel,
                             num_heads=num_heads, num_layers=L)
    out = pl.pallas_call(
        kern,
        out_shape=jax.ShapeDtypeStruct((N, D), x.dtype),
        grid=(1,),
        in_specs=[
            full((N, D)),                    # x (flat)
            full((N, N)),                    # block-diag mask
            full((L, D, 3 * D)),             # fused qkv weights
            full((L, 1, 3 * D)),             # fused qkv bias
            full((L, D, D)),                 # out-proj weight
            full((L, D, FF)),                # ff1 weight
            full((L, 1, FF)),                # ff1 bias
            full((L, FF, D)),                # ff2 weight
            full((L, 6, D)),                 # [bo, g1, be1, bb2, g2, be2]
        ],
        out_specs=full((N, D)),
        compiler_params=pltpu.CompilerParams(dimension_semantics=("arbitrary",)),
    )(xf, big_mask, wqkv, bqkv, wo, w1, bb1, w2, vecs)
    return out.reshape(B, S, D)


def init_layer_params(key, d_model, ff_layers):
    """Deterministic parameter init for one Decoder layer (shapes match nn modules;
    weights stored pre-transposed for right-multiplication x @ W)."""
    ks = jax.random.split(key, 8)
    s_attn = 1.0 / math.sqrt(d_model)
    s_ff1 = 1.0 / math.sqrt(d_model)
    s_ff2 = 1.0 / math.sqrt(ff_layers)
    return {
        "wq": jax.random.uniform(ks[0], (d_model, d_model), jnp.float32, -s_attn, s_attn),
        "wk": jax.random.uniform(ks[1], (d_model, d_model), jnp.float32, -s_attn, s_attn),
        "wv": jax.random.uniform(ks[2], (d_model, d_model), jnp.float32, -s_attn, s_attn),
        "bq": jnp.zeros((1, d_model), jnp.float32),
        "bk": jnp.zeros((1, d_model), jnp.float32),
        "bv": jnp.zeros((1, d_model), jnp.float32),
        "wo": jax.random.uniform(ks[3], (d_model, d_model), jnp.float32, -s_attn, s_attn),
        "bo": jnp.zeros((1, d_model), jnp.float32),
        "g1": jnp.ones((1, d_model), jnp.float32),
        "be1": jnp.zeros((1, d_model), jnp.float32),
        "w1": jax.random.uniform(ks[4], (d_model, ff_layers), jnp.float32, -s_ff1, s_ff1),
        "bb1": jax.random.uniform(ks[5], (1, ff_layers), jnp.float32, -s_ff1, s_ff1),
        "w2": jax.random.uniform(ks[6], (ff_layers, d_model), jnp.float32, -s_ff2, s_ff2),
        "bb2": jax.random.uniform(ks[7], (1, d_model), jnp.float32, -s_ff2, s_ff2),
        "g2": jnp.ones((1, d_model), jnp.float32),
        "be2": jnp.zeros((1, d_model), jnp.float32),
    }


if __name__ == "__main__":
    # Small deterministic config: d_model=32, ff_layers=64, num_heads=4,
    # dropout=0.0 (eval-mode identity), num_layers=2; batch=2, seq=8.
    d_model, ff_layers, num_heads, num_layers = 32, 64, 4, 2
    B, S = 2, 8

    root = jax.random.PRNGKey(0)
    kx, *kls = jax.random.split(root, 1 + num_layers)

    x = jax.random.normal(kx, (B, S, d_model), jnp.float32)
    # Additive float attn_mask (S, S): causal (0 on/below diag, -1e9 above).
    causal = jnp.tril(jnp.ones((S, S), jnp.float32))
    mask = jnp.where(causal > 0, 0.0, -1e9).astype(jnp.float32)

    layer_params = [init_layer_params(k, d_model, ff_layers) for k in kls]

    fwd = jax.jit(decoder_layers_forward, static_argnums=3)
    out = fwd(x, mask, layer_params, num_heads)
    jax.block_until_ready(out)
    assert out.shape == (B, S, d_model)
    print("KERNEL_OK")
</pallas_src>

<mosaic_0001>
module attributes {stable_mosaic.version = 11 : i64} {
  func.func @decoder_layers_kernel(%arg0: i32, %arg1: memref<16x32xf32, #tpu.memory_space<vmem>>, %arg2: memref<16x16xf32, #tpu.memory_space<vmem>>, %arg3: memref<2x32x96xf32, #tpu.memory_space<vmem>>, %arg4: memref<2x1x96xf32, #tpu.memory_space<vmem>>, %arg5: memref<2x32x32xf32, #tpu.memory_space<vmem>>, %arg6: memref<2x32x64xf32, #tpu.memory_space<vmem>>, %arg7: memref<2x1x64xf32, #tpu.memory_space<vmem>>, %arg8: memref<2x64x32xf32, #tpu.memory_space<vmem>>, %arg9: memref<2x6x32xf32, #tpu.memory_space<vmem>>, %arg10: memref<16x32xf32, #tpu.memory_space<vmem>>) attributes {dimension_semantics = [#tpu.dimension_semantics<arbitrary>], iteration_bounds = array<i64: 1>, scalar_prefetch = 0 : i64, scratch_operands = 0 : i64, tpu.core_type = #tpu.core_type<tc>, window_params = [{pipeline_mode = #tpu.pipeline_mode<synchronous>, transform_indices = @transform_0, window_bounds = array<i64: 16, 32>}, {pipeline_mode = #tpu.pipeline_mode<synchronous>, transform_indices = @transform_1, window_bounds = array<i64: 16, 16>}, {pipeline_mode = #tpu.pipeline_mode<synchronous>, transform_indices = @transform_2, window_bounds = array<i64: 2, 32, 96>}, {pipeline_mode = #tpu.pipeline_mode<synchronous>, transform_indices = @transform_3, window_bounds = array<i64: 2, 1, 96>}, {pipeline_mode = #tpu.pipeline_mode<synchronous>, transform_indices = @transform_4, window_bounds = array<i64: 2, 32, 32>}, {pipeline_mode = #tpu.pipeline_mode<synchronous>, transform_indices = @transform_5, window_bounds = array<i64: 2, 32, 64>}, {pipeline_mode = #tpu.pipeline_mode<synchronous>, transform_indices = @transform_6, window_bounds = array<i64: 2, 1, 64>}, {pipeline_mode = #tpu.pipeline_mode<synchronous>, transform_indices = @transform_7, window_bounds = array<i64: 2, 64, 32>}, {pipeline_mode = #tpu.pipeline_mode<synchronous>, transform_indices = @transform_8, window_bounds = array<i64: 2, 6, 32>}, {pipeline_mode = #tpu.pipeline_mode<synchronous>, transform_indices = @transform_9, window_bounds = array<i64: 16, 32>}]} {
    %c0 = arith.constant 0 : index
    %c0_0 = arith.constant 0 : index
    %0 = vector.load %arg2[%c0, %c0_0] : memref<16x16xf32, #tpu.memory_space<vmem>>, vector<16x16xf32>
    %1 = tpu.iota {dimensions = array<i32: 1>} : vector<1x32xi32>
    %c0_i32 = arith.constant 0 : i32
    %2 = vector.broadcast %c0_i32 : i32 to vector<1x32xi32>
    %3 = arith.cmpi sge, %1, %2 : vector<1x32xi32>
    %c8_i32 = arith.constant 8 : i32
    %4 = vector.broadcast %c8_i32 : i32 to vector<1x32xi32>
    %5 = arith.cmpi slt, %1, %4 : vector<1x32xi32>
    %6 = arith.andi %3, %5 : vector<1x32xi1>
    %cst = arith.constant 1.000000e+00 : f32
    %cst_1 = arith.constant 0.000000e+00 : f32
    %7 = vector.broadcast %cst : f32 to vector<1x32xf32>
    %8 = vector.broadcast %cst_1 : f32 to vector<1x32xf32>
    %9 = arith.select %6, %7, %8 : vector<1x32xi1>, vector<1x32xf32>
    %c8_i32_2 = arith.constant 8 : i32
    %10 = vector.broadcast %c8_i32_2 : i32 to vector<1x32xi32>
    %11 = arith.cmpi sge, %1, %10 : vector<1x32xi32>
    %c16_i32 = arith.constant 16 : i32
    %12 = vector.broadcast %c16_i32 : i32 to vector<1x32xi32>
    %13 = arith.cmpi slt, %1, %12 : vector<1x32xi32>
    %14 = arith.andi %11, %13 : vector<1x32xi1>
    %cst_3 = arith.constant 1.000000e+00 : f32
    %cst_4 = arith.constant 0.000000e+00 : f32
    %15 = vector.broadcast %cst_3 : f32 to vector<1x32xf32>
    %16 = vector.broadcast %cst_4 : f32 to vector<1x32xf32>
    %17 = arith.select %14, %15, %16 : vector<1x32xi1>, vector<1x32xf32>
    %c16_i32_5 = arith.constant 16 : i32
    %18 = vector.broadcast %c16_i32_5 : i32 to vector<1x32xi32>
    %19 = arith.cmpi sge, %1, %18 : vector<1x32xi32>
    %c24_i32 = arith.constant 24 : i32
    %20 = vector.broadcast %c24_i32 : i32 to vector<1x32xi32>
    %21 = arith.cmpi slt, %1, %20 : vector<1x32xi32>
    %22 = arith.andi %19, %21 : vector<1x32xi1>
    %cst_6 = arith.constant 1.000000e+00 : f32
    %cst_7 = arith.constant 0.000000e+00 : f32
    %23 = vector.broadcast %cst_6 : f32 to vector<1x32xf32>
    %24 = vector.broadcast %cst_7 : f32 to vector<1x32xf32>
    %25 = arith.select %22, %23, %24 : vector<1x32xi1>, vector<1x32xf32>
    %c24_i32_8 = arith.constant 24 : i32
    %26 = vector.broadcast %c24_i32_8 : i32 to vector<1x32xi32>
    %27 = arith.cmpi sge, %1, %26 : vector<1x32xi32>
    %c32_i32 = arith.constant 32 : i32
    %28 = vector.broadcast %c32_i32 : i32 to vector<1x32xi32>
    %29 = arith.cmpi slt, %1, %28 : vector<1x32xi32>
    %30 = arith.andi %27, %29 : vector<1x32xi1>
    %cst_9 = arith.constant 1.000000e+00 : f32
    %cst_10 = arith.constant 0.000000e+00 : f32
    %31 = vector.broadcast %cst_9 : f32 to vector<1x32xf32>
    %32 = vector.broadcast %cst_10 : f32 to vector<1x32xf32>
    %33 = arith.select %30, %31, %32 : vector<1x32xi1>, vector<1x32xf32>
    %c0_11 = arith.constant 0 : index
    %c0_12 = arith.constant 0 : index
    %34 = vector.load %arg1[%c0_11, %c0_12] : memref<16x32xf32, #tpu.memory_space<vmem>>, vector<16x32xf32>
    %c0_13 = arith.constant 0 : index
    %c0_14 = arith.constant 0 : index
    %c0_15 = arith.constant 0 : index
    %35 = vector.load %arg3[%c0_13, %c0_14, %c0_15] : memref<2x32x96xf32, #tpu.memory_space<vmem>>, vector<1x32x96xf32>
    %36 = vector.shape_cast %35 : vector<1x32x96xf32> to vector<32x96xf32>
    %c0_16 = arith.constant 0 : index
    %c0_17 = arith.constant 0 : index
    %c0_18 = arith.constant 0 : index
    %37 = vector.load %arg4[%c0_16, %c0_17, %c0_18] : memref<2x1x96xf32, #tpu.memory_space<vmem>>, vector<1x1x96xf32>
    %38 = vector.shape_cast %37 : vector<1x1x96xf32> to vector<1x96xf32>
    %c0_19 = arith.constant 0 : index
    %c0_20 = arith.constant 0 : index
    %c0_21 = arith.constant 0 : index
    %39 = vector.load %arg5[%c0_19, %c0_20, %c0_21] : memref<2x32x32xf32, #tpu.memory_space<vmem>>, vector<1x32x32xf32>
    %40 = vector.shape_cast %39 : vector<1x32x32xf32> to vector<32x32xf32>
    %c0_22 = arith.constant 0 : index
    %c0_23 = arith.constant 0 : index
    %c0_24 = arith.constant 0 : index
    %41 = vector.load %arg6[%c0_22, %c0_23, %c0_24] : memref<2x32x64xf32, #tpu.memory_space<vmem>>, vector<1x32x64xf32>
    %42 = vector.shape_cast %41 : vector<1x32x64xf32> to vector<32x64xf32>
    %c0_25 = arith.constant 0 : index
    %c0_26 = arith.constant 0 : index
    %c0_27 = arith.constant 0 : index
    %43 = vector.load %arg7[%c0_25, %c0_26, %c0_27] : memref<2x1x64xf32, #tpu.memory_space<vmem>>, vector<1x1x64xf32>
    %44 = vector.shape_cast %43 : vector<1x1x64xf32> to vector<1x64xf32>
    %c0_28 = arith.constant 0 : index
    %c0_29 = arith.constant 0 : index
    %c0_30 = arith.constant 0 : index
    %45 = vector.load %arg8[%c0_28, %c0_29, %c0_30] : memref<2x64x32xf32, #tpu.memory_space<vmem>>, vector<1x64x32xf32>
    %46 = vector.shape_cast %45 : vector<1x64x32xf32> to vector<64x32xf32>
    %c0_31 = arith.constant 0 : index
    %c0_32 = arith.constant 0 : index
    %c0_33 = arith.constant 0 : index
    %47 = vector.load %arg9[%c0_31, %c0_32, %c0_33] : memref<2x6x32xf32, #tpu.memory_space<vmem>>, vector<1x1x32xf32>
    %48 = vector.shape_cast %47 : vector<1x1x32xf32> to vector<1x32xf32>
    %c0_34 = arith.constant 0 : index
    %c1 = arith.constant 1 : index
    %c0_35 = arith.constant 0 : index
    %49 = vector.load %arg9[%c0_34, %c1, %c0_35] : memref<2x6x32xf32, #tpu.memory_space<vmem>>, vector<1x1x32xf32>
    %50 = vector.shape_cast %49 : vector<1x1x32xf32> to vector<1x32xf32>
    %c0_36 = arith.constant 0 : index
    %c2 = arith.constant 2 : index
    %c0_37 = arith.constant 0 : index
    %51 = vector.load %arg9[%c0_36, %c2, %c0_37] : memref<2x6x32xf32, #tpu.memory_space<vmem>>, vector<1x1x32xf32>
    %52 = vector.shape_cast %51 : vector<1x1x32xf32> to vector<1x32xf32>
    %c0_38 = arith.constant 0 : index
    %c3 = arith.constant 3 : index
    %c0_39 = arith.constant 0 : index
    %53 = vector.load %arg9[%c0_38, %c3, %c0_39] : memref<2x6x32xf32, #tpu.memory_space<vmem>>, vector<1x1x32xf32>
    %54 = vector.shape_cast %53 : vector<1x1x32xf32> to vector<1x32xf32>
    %c0_40 = arith.constant 0 : index
    %c4 = arith.constant 4 : index
    %c0_41 = arith.constant 0 : index
    %55 = vector.load %arg9[%c0_40, %c4, %c0_41] : memref<2x6x32xf32, #tpu.memory_space<vmem>>, vector<1x1x32xf32>
    %56 = vector.shape_cast %55 : vector<1x1x32xf32> to vector<1x32xf32>
    %c0_42 = arith.constant 0 : index
    %c5 = arith.constant 5 : index
    %c0_43 = arith.constant 0 : index
    %57 = vector.load %arg9[%c0_42, %c5, %c0_43] : memref<2x6x32xf32, #tpu.memory_space<vmem>>, vector<1x1x32xf32>
    %58 = vector.shape_cast %57 : vector<1x1x32xf32> to vector<1x32xf32>
    %cst_44 = arith.constant dense<0.000000e+00> : vector<16x96xf32>
    %59 = tpu.matmul %34, %36, %cst_44 {dimension_numbers = #tpu.dot_dimension_numbers<[1], [0], [0], [1], [0, 0, 1, 1], [], []>} : vector<16x32xf32>, vector<32x96xf32>, vector<16x96xf32> -> vector<16x96xf32>
    %60 = vector.broadcast %38 : vector<1x96xf32> to vector<16x96xf32>
    %61 = arith.addf %59, %60 : vector<16x96xf32>
    %62 = vector.extract_strided_slice %61 {offsets = [0, 0], sizes = [16, 32], strides = [1, 1]} : vector<16x96xf32> to vector<16x32xf32>
    %63 = vector.extract_strided_slice %61 {offsets = [0, 32], sizes = [16, 32], strides = [1, 1]} : vector<16x96xf32> to vector<16x32xf32>
    %64 = vector.extract_strided_slice %61 {offsets = [0, 64], sizes = [16, 32], strides = [1, 1]} : vector<16x96xf32> to vector<16x32xf32>
    %cst_45 = arith.constant 0.000000e+00 : f32
    %65 = vector.broadcast %cst_45 : f32 to vector<16x32xf32>
    %66 = vector.broadcast %9 : vector<1x32xf32> to vector<16x32xf32>
    %67 = arith.mulf %62, %66 : vector<16x32xf32>
    "tpu.trace_start"() <{level = 10 : i32, message = "nd,md->nm"}> : () -> ()
    %cst_46 = arith.constant dense<0.000000e+00> : vector<16x16xf32>
    %68 = tpu.matmul %67, %63, %cst_46 {dimension_numbers = #tpu.dot_dimension_numbers<[1], [1], [0], [0], [0, 0, 1, 0], [], []>} : vector<16x32xf32>, vector<16x32xf32>, vector<16x16xf32> -> vector<16x16xf32>
    "tpu.trace_stop"() : () -> ()
    %cst_47 = arith.constant 0.353553385 : f32
    %69 = vector.broadcast %cst_47 : f32 to vector<16x16xf32>
    %70 = arith.mulf %68, %69 : vector<16x16xf32>
    %71 = arith.addf %70, %0 : vector<16x16xf32>
    %cst_48 = arith.constant dense<0xFF800000> : vector<16xf32>
    %72 = vector.multi_reduction <maximumf>, %71, %cst_48 [1] : vector<16x16xf32> to vector<16xf32>
    %73 = vector.shape_cast %72 : vector<16xf32> to vector<16x1xf32>
    %74 = vector.broadcast %73 : vector<16x1xf32> to vector<16x16xf32>
    %75 = arith.subf %71, %74 : vector<16x16xf32>
    %76 = math.exp %75 : vector<16x16xf32>
    %cst_49 = arith.constant dense<0.000000e+00> : vector<16xf32>
    %77 = vector.multi_reduction <add>, %76, %cst_49 [1] : vector<16x16xf32> to vector<16xf32>
    %78 = vector.shape_cast %77 : vector<16xf32> to vector<16x1xf32>
    %79 = tpu.reciprocal %78 {approx = true} : vector<16x1xf32> -> vector<16x1xf32>
    %80 = vector.broadcast %79 : vector<16x1xf32> to vector<16x16xf32>
    %81 = arith.mulf %76, %80 : vector<16x16xf32>
    %82 = vector.broadcast %9 : vector<1x32xf32> to vector<16x32xf32>
    %83 = arith.mulf %64, %82 : vector<16x32xf32>
    %cst_50 = arith.constant dense<0.000000e+00> : vector<16x32xf32>
    %84 = tpu.matmul %81, %83, %cst_50 {dimension_numbers = #tpu.dot_dimension_numbers<[1], [0], [0], [1], [0, 0, 1, 1], [], []>} : vector<16x16xf32>, vector<16x32xf32>, vector<16x32xf32> -> vector<16x32xf32>
    %85 = arith.addf %65, %84 : vector<16x32xf32>
    %86 = vector.broadcast %17 : vector<1x32xf32> to vector<16x32xf32>
    %87 = arith.mulf %62, %86 : vector<16x32xf32>
    "tpu.trace_start"() <{level = 10 : i32, message = "nd,md->nm"}> : () -> ()
    %cst_51 = arith.constant dense<0.000000e+00> : vector<16x16xf32>
    %88 = tpu.matmul %87, %63, %cst_51 {dimension_numbers = #tpu.dot_dimension_numbers<[1], [1], [0], [0], [0, 0, 1, 0], [], []>} : vector<16x32xf32>, vector<16x32xf32>, vector<16x16xf32> -> vector<16x16xf32>
    "tpu.trace_stop"() : () -> ()
    %cst_52 = arith.constant 0.353553385 : f32
    %89 = vector.broadcast %cst_52 : f32 to vector<16x16xf32>
    %90 = arith.mulf %88, %89 : vector<16x16xf32>
    %91 = arith.addf %90, %0 : vector<16x16xf32>
    %cst_53 = arith.constant dense<0xFF800000> : vector<16xf32>
    %92 = vector.multi_reduction <maximumf>, %91, %cst_53 [1] : vector<16x16xf32> to vector<16xf32>
    %93 = vector.shape_cast %92 : vector<16xf32> to vector<16x1xf32>
    %94 = vector.broadcast %93 : vector<16x1xf32> to vector<16x16xf32>
    %95 = arith.subf %91, %94 : vector<16x16xf32>
    %96 = math.exp %95 : vector<16x16xf32>
    %cst_54 = arith.constant dense<0.000000e+00> : vector<16xf32>
    %97 = vector.multi_reduction <add>, %96, %cst_54 [1] : vector<16x16xf32> to vector<16xf32>
    %98 = vector.shape_cast %97 : vector<16xf32> to vector<16x1xf32>
    %99 = tpu.reciprocal %98 {approx = true} : vector<16x1xf32> -> vector<16x1xf32>
    %100 = vector.broadcast %99 : vector<16x1xf32> to vector<16x16xf32>
    %101 = arith.mulf %96, %100 : vector<16x16xf32>
    %102 = vector.broadcast %17 : vector<1x32xf32> to vector<16x32xf32>
    %103 = arith.mulf %64, %102 : vector<16x32xf32>
    %cst_55 = arith.constant dense<0.000000e+00> : vector<16x32xf32>
    %104 = tpu.matmul %101, %103, %cst_55 {dimension_numbers = #tpu.dot_dimension_numbers<[1], [0], [0], [1], [0, 0, 1, 1], [], []>} : vector<16x16xf32>, vector<16x32xf32>, vector<16x32xf32> -> vector<16x32xf32>
    %105 = arith.addf %85, %104 : vector<16x32xf32>
    %106 = vector.broadcast %25 : vector<1x32xf32> to vector<16x32xf32>
    %107 = arith.mulf %62, %106 : vector<16x32xf32>
    "tpu.trace_start"() <{level = 10 : i32, message = "nd,md->nm"}> : () -> ()
    %cst_56 = arith.constant dense<0.000000e+00> : vector<16x16xf32>
    %108 = tpu.matmul %107, %63, %cst_56 {dimension_numbers = #tpu.dot_dimension_numbers<[1], [1], [0], [0], [0, 0, 1, 0], [], []>} : vector<16x32xf32>, vector<16x32xf32>, vector<16x16xf32> -> vector<16x16xf32>
    "tpu.trace_stop"() : () -> ()
    %cst_57 = arith.constant 0.353553385 : f32
    %109 = vector.broadcast %cst_57 : f32 to vector<16x16xf32>
    %110 = arith.mulf %108, %109 : vector<16x16xf32>
    %111 = arith.addf %110, %0 : vector<16x16xf32>
    %cst_58 = arith.constant dense<0xFF800000> : vector<16xf32>
    %112 = vector.multi_reduction <maximumf>, %111, %cst_58 [1] : vector<16x16xf32> to vector<16xf32>
    %113 = vector.shape_cast %112 : vector<16xf32> to vector<16x1xf32>
    %114 = vector.broadcast %113 : vector<16x1xf32> to vector<16x16xf32>
    %115 = arith.subf %111, %114 : vector<16x16xf32>
    %116 = math.exp %115 : vector<16x16xf32>
    %cst_59 = arith.constant dense<0.000000e+00> : vector<16xf32>
    %117 = vector.multi_reduction <add>, %116, %cst_59 [1] : vector<16x16xf32> to vector<16xf32>
    %118 = vector.shape_cast %117 : vector<16xf32> to vector<16x1xf32>
    %119 = tpu.reciprocal %118 {approx = true} : vector<16x1xf32> -> vector<16x1xf32>
    %120 = vector.broadcast %119 : vector<16x1xf32> to vector<16x16xf32>
    %121 = arith.mulf %116, %120 : vector<16x16xf32>
    %122 = vector.broadcast %25 : vector<1x32xf32> to vector<16x32xf32>
    %123 = arith.mulf %64, %122 : vector<16x32xf32>
    %cst_60 = arith.constant dense<0.000000e+00> : vector<16x32xf32>
    %124 = tpu.matmul %121, %123, %cst_60 {dimension_numbers = #tpu.dot_dimension_numbers<[1], [0], [0], [1], [0, 0, 1, 1], [], []>} : vector<16x16xf32>, vector<16x32xf32>, vector<16x32xf32> -> vector<16x32xf32>
    %125 = arith.addf %105, %124 : vector<16x32xf32>
    %126 = vector.broadcast %33 : vector<1x32xf32> to vector<16x32xf32>
    %127 = arith.mulf %62, %126 : vector<16x32xf32>
    "tpu.trace_start"() <{level = 10 : i32, message = "nd,md->nm"}> : () -> ()
    %cst_61 = arith.constant dense<0.000000e+00> : vector<16x16xf32>
    %128 = tpu.matmul %127, %63, %cst_61 {dimension_numbers = #tpu.dot_dimension_numbers<[1], [1], [0], [0], [0, 0, 1, 0], [], []>} : vector<16x32xf32>, vector<16x32xf32>, vector<16x16xf32> -> vector<16x16xf32>
    "tpu.trace_stop"() : () -> ()
    %cst_62 = arith.constant 0.353553385 : f32
    %129 = vector.broadcast %cst_62 : f32 to vector<16x16xf32>
    %130 = arith.mulf %128, %129 : vector<16x16xf32>
    %131 = arith.addf %130, %0 : vector<16x16xf32>
    %cst_63 = arith.constant dense<0xFF800000> : vector<16xf32>
    %132 = vector.multi_reduction <maximumf>, %131, %cst_63 [1] : vector<16x16xf32> to vector<16xf32>
    %133 = vector.shape_cast %132 : vector<16xf32> to vector<16x1xf32>
    %134 = vector.broadcast %133 : vector<16x1xf32> to vector<16x16xf32>
    %135 = arith.subf %131, %134 : vector<16x16xf32>
    %136 = math.exp %135 : vector<16x16xf32>
    %cst_64 = arith.constant dense<0.000000e+00> : vector<16xf32>
    %137 = vector.multi_reduction <add>, %136, %cst_64 [1] : vector<16x16xf32> to vector<16xf32>
    %138 = vector.shape_cast %137 : vector<16xf32> to vector<16x1xf32>
    %139 = tpu.reciprocal %138 {approx = true} : vector<16x1xf32> -> vector<16x1xf32>
    %140 = vector.broadcast %139 : vector<16x1xf32> to vector<16x16xf32>
    %141 = arith.mulf %136, %140 : vector<16x16xf32>
    %142 = vector.broadcast %33 : vector<1x32xf32> to vector<16x32xf32>
    %143 = arith.mulf %64, %142 : vector<16x32xf32>
    %cst_65 = arith.constant dense<0.000000e+00> : vector<16x32xf32>
    %144 = tpu.matmul %141, %143, %cst_65 {dimension_numbers = #tpu.dot_dimension_numbers<[1], [0], [0], [1], [0, 0, 1, 1], [], []>} : vector<16x16xf32>, vector<16x32xf32>, vector<16x32xf32> -> vector<16x32xf32>
    %145 = arith.addf %125, %144 : vector<16x32xf32>
    %cst_66 = arith.constant dense<0.000000e+00> : vector<16x32xf32>
    %146 = tpu.matmul %145, %40, %cst_66 {dimension_numbers = #tpu.dot_dimension_numbers<[1], [0], [0], [1], [0, 0, 1, 1], [], []>} : vector<16x32xf32>, vector<32x32xf32>, vector<16x32xf32> -> vector<16x32xf32>
    %147 = vector.broadcast %48 : vector<1x32xf32> to vector<16x32xf32>
    %148 = arith.addf %146, %147 : vector<16x32xf32>
    %149 = arith.addf %34, %148 : vector<16x32xf32>
    %cst_67 = arith.constant dense<0.000000e+00> : vector<16xf32>
    %150 = vector.multi_reduction <add>, %149, %cst_67 [1] : vector<16x32xf32> to vector<16xf32>
    %151 = vector.shape_cast %150 : vector<16xf32> to vector<16x1xf32>
    %cst_68 = arith.constant 3.200000e+01 : f32
    %152 = vector.broadcast %cst_68 : f32 to vector<16x1xf32>
    %153 = arith.divf %151, %152 : vector<16x1xf32>
    %154 = vector.broadcast %153 : vector<16x1xf32> to vector<16x32xf32>
    %155 = arith.subf %149, %154 : vector<16x32xf32>
    %156 = arith.mulf %155, %155 : vector<16x32xf32>
    %cst_69 = arith.constant dense<0.000000e+00> : vector<16xf32>
    %157 = vector.multi_reduction <add>, %156, %cst_69 [1] : vector<16x32xf32> to vector<16xf32>
    %158 = vector.shape_cast %157 : vector<16xf32> to vector<16x1xf32>
    %cst_70 = arith.constant 3.200000e+01 : f32
    %159 = vector.broadcast %cst_70 : f32 to vector<16x1xf32>
    %160 = arith.divf %158, %159 : vector<16x1xf32>
    %161 = vector.broadcast %153 : vector<16x1xf32> to vector<16x32xf32>
    %162 = arith.subf %149, %161 : vector<16x32xf32>
    %cst_71 = arith.constant 9.99999974E-6 : f32
    %163 = vector.broadcast %cst_71 : f32 to vector<16x1xf32>
    %164 = arith.addf %160, %163 : vector<16x1xf32>
    %165 = math.rsqrt %164 : vector<16x1xf32>
    %166 = vector.broadcast %165 : vector<16x1xf32> to vector<16x32xf32>
    %167 = arith.mulf %162, %166 : vector<16x32xf32>
    %168 = vector.broadcast %50 : vector<1x32xf32> to vector<16x32xf32>
    %169 = arith.mulf %167, %168 : vector<16x32xf32>
    %170 = vector.broadcast %52 : vector<1x32xf32> to vector<16x32xf32>
    %171 = arith.addf %169, %170 : vector<16x32xf32>
    %cst_72 = arith.constant dense<0.000000e+00> : vector<16x64xf32>
    %172 = tpu.matmul %171, %42, %cst_72 {dimension_numbers = #tpu.dot_dimension_numbers<[1], [0], [0], [1], [0, 0, 1, 1], [], []>} : vector<16x32xf32>, vector<32x64xf32>, vector<16x64xf32> -> vector<16x64xf32>
    %173 = vector.broadcast %44 : vector<1x64xf32> to vector<16x64xf32>
    %174 = arith.addf %172, %173 : vector<16x64xf32>
    %cst_73 = arith.constant 0.000000e+00 : f32
    %175 = vector.broadcast %cst_73 : f32 to vector<16x64xf32>
    %176 = arith.maximumf %174, %175 : vector<16x64xf32>
    %cst_74 = arith.constant dense<0.000000e+00> : vector<16x32xf32>
    %177 = tpu.matmul %176, %46, %cst_74 {dimension_numbers = #tpu.dot_dimension_numbers<[1], [0], [0], [1], [0, 0, 1, 1], [], []>} : vector<16x64xf32>, vector<64x32xf32>, vector<16x32xf32> -> vector<16x32xf32>
    %178 = vector.broadcast %54 : vector<1x32xf32> to vector<16x32xf32>
    %179 = arith.addf %177, %178 : vector<16x32xf32>
    %180 = arith.addf %171, %179 : vector<16x32xf32>
    %cst_75 = arith.constant dense<0.000000e+00> : vector<16xf32>
    %181 = vector.multi_reduction <add>, %180, %cst_75 [1] : vector<16x32xf32> to vector<16xf32>
    %182 = vector.shape_cast %181 : vector<16xf32> to vector<16x1xf32>
    %cst_76 = arith.constant 3.200000e+01 : f32
    %183 = vector.broadcast %cst_76 : f32 to vector<16x1xf32>
    %184 = arith.divf %182, %183 : vector<16x1xf32>
    %185 = vector.broadcast %184 : vector<16x1xf32> to vector<16x32xf32>
    %186 = arith.subf %180, %185 : vector<16x32xf32>
    %187 = arith.mulf %186, %186 : vector<16x32xf32>
    %cst_77 = arith.constant dense<0.000000e+00> : vector<16xf32>
    %188 = vector.multi_reduction <add>, %187, %cst_77 [1] : vector<16x32xf32> to vector<16xf32>
    %189 = vector.shape_cast %188 : vector<16xf32> to vector<16x1xf32>
    %cst_78 = arith.constant 3.200000e+01 : f32
    %190 = vector.broadcast %cst_78 : f32 to vector<16x1xf32>
    %191 = arith.divf %189, %190 : vector<16x1xf32>
    %192 = vector.broadcast %184 : vector<16x1xf32> to vector<16x32xf32>
    %193 = arith.subf %180, %192 : vector<16x32xf32>
    %cst_79 = arith.constant 9.99999974E-6 : f32
    %194 = vector.broadcast %cst_79 : f32 to vector<16x1xf32>
    %195 = arith.addf %191, %194 : vector<16x1xf32>
    %196 = math.rsqrt %195 : vector<16x1xf32>
    %197 = vector.broadcast %196 : vector<16x1xf32> to vector<16x32xf32>
    %198 = arith.mulf %193, %197 : vector<16x32xf32>
    %199 = vector.broadcast %56 : vector<1x32xf32> to vector<16x32xf32>
    %200 = arith.mulf %198, %199 : vector<16x32xf32>
    %201 = vector.broadcast %58 : vector<1x32xf32> to vector<16x32xf32>
    %202 = arith.addf %200, %201 : vector<16x32xf32>
    %c1_80 = arith.constant 1 : index
    %c0_81 = arith.constant 0 : index
    %c0_82 = arith.constant 0 : index
    %203 = vector.load %arg3[%c1_80, %c0_81, %c0_82] : memref<2x32x96xf32, #tpu.memory_space<vmem>>, vector<1x32x96xf32>
    %204 = vector.shape_cast %203 : vector<1x32x96xf32> to vector<32x96xf32>
    %c1_83 = arith.constant 1 : index
    %c0_84 = arith.constant 0 : index
    %c0_85 = arith.constant 0 : index
    %205 = vector.load %arg4[%c1_83, %c0_84, %c0_85] : memref<2x1x96xf32, #tpu.memory_space<vmem>>, vector<1x1x96xf32>
    %206 = vector.shape_cast %205 : vector<1x1x96xf32> to vector<1x96xf32>
    %c1_86 = arith.constant 1 : index
    %c0_87 = arith.constant 0 : index
    %c0_88 = arith.constant 0 : index
    %207 = vector.load %arg5[%c1_86, %c0_87, %c0_88] : memref<2x32x32xf32, #tpu.memory_space<vmem>>, vector<1x32x32xf32>
    %208 = vector.shape_cast %207 : vector<1x32x32xf32> to vector<32x32xf32>
    %c1_89 = arith.constant 1 : index
    %c0_90 = arith.constant 0 : index
    %c0_91 = arith.constant 0 : index
    %209 = vector.load %arg6[%c1_89, %c0_90, %c0_91] : memref<2x32x64xf32, #tpu.memory_space<vmem>>, vector<1x32x64xf32>
    %210 = vector.shape_cast %209 : vector<1x32x64xf32> to vector<32x64xf32>
    %c1_92 = arith.constant 1 : index
    %c0_93 = arith.constant 0 : index
    %c0_94 = arith.constant 0 : index
    %211 = vector.load %arg7[%c1_92, %c0_93, %c0_94] : memref<2x1x64xf32, #tpu.memory_space<vmem>>, vector<1x1x64xf32>
    %212 = vector.shape_cast %211 : vector<1x1x64xf32> to vector<1x64xf32>
    %c1_95 = arith.constant 1 : index
    %c0_96 = arith.constant 0 : index
    %c0_97 = arith.constant 0 : index
    %213 = vector.load %arg8[%c1_95, %c0_96, %c0_97] : memref<2x64x32xf32, #tpu.memory_space<vmem>>, vector<1x64x32xf32>
    %214 = vector.shape_cast %213 : vector<1x64x32xf32> to vector<64x32xf32>
    %c1_98 = arith.constant 1 : index
    %c0_99 = arith.constant 0 : index
    %c0_100 = arith.constant 0 : index
    %215 = vector.load %arg9[%c1_98, %c0_99, %c0_100] : memref<2x6x32xf32, #tpu.memory_space<vmem>>, vector<1x1x32xf32>
    %216 = vector.shape_cast %215 : vector<1x1x32xf32> to vector<1x32xf32>
    %c1_101 = arith.constant 1 : index
    %c1_102 = arith.constant 1 : index
    %c0_103 = arith.constant 0 : index
    %217 = vector.load %arg9[%c1_101, %c1_102, %c0_103] : memref<2x6x32xf32, #tpu.memory_space<vmem>>, vector<1x1x32xf32>
    %218 = vector.shape_cast %217 : vector<1x1x32xf32> to vector<1x32xf32>
    %c1_104 = arith.constant 1 : index
    %c2_105 = arith.constant 2 : index
    %c0_106 = arith.constant 0 : index
    %219 = vector.load %arg9[%c1_104, %c2_105, %c0_106] : memref<2x6x32xf32, #tpu.memory_space<vmem>>, vector<1x1x32xf32>
    %220 = vector.shape_cast %219 : vector<1x1x32xf32> to vector<1x32xf32>
    %c1_107 = arith.constant 1 : index
    %c3_108 = arith.constant 3 : index
    %c0_109 = arith.constant 0 : index
    %221 = vector.load %arg9[%c1_107, %c3_108, %c0_109] : memref<2x6x32xf32, #tpu.memory_space<vmem>>, vector<1x1x32xf32>
    %222 = vector.shape_cast %221 : vector<1x1x32xf32> to vector<1x32xf32>
    %c1_110 = arith.constant 1 : index
    %c4_111 = arith.constant 4 : index
    %c0_112 = arith.constant 0 : index
    %223 = vector.load %arg9[%c1_110, %c4_111, %c0_112] : memref<2x6x32xf32, #tpu.memory_space<vmem>>, vector<1x1x32xf32>
    %224 = vector.shape_cast %223 : vector<1x1x32xf32> to vector<1x32xf32>
    %c1_113 = arith.constant 1 : index
    %c5_114 = arith.constant 5 : index
    %c0_115 = arith.constant 0 : index
    %225 = vector.load %arg9[%c1_113, %c5_114, %c0_115] : memref<2x6x32xf32, #tpu.memory_space<vmem>>, vector<1x1x32xf32>
    %226 = vector.shape_cast %225 : vector<1x1x32xf32> to vector<1x32xf32>
    %cst_116 = arith.constant dense<0.000000e+00> : vector<16x96xf32>
    %227 = tpu.matmul %202, %204, %cst_116 {dimension_numbers = #tpu.dot_dimension_numbers<[1], [0], [0], [1], [0, 0, 1, 1], [], []>} : vector<16x32xf32>, vector<32x96xf32>, vector<16x96xf32> -> vector<16x96xf32>
    %228 = vector.broadcast %206 : vector<1x96xf32> to vector<16x96xf32>
    %229 = arith.addf %227, %228 : vector<16x96xf32>
    %230 = vector.extract_strided_slice %229 {offsets = [0, 0], sizes = [16, 32], strides = [1, 1]} : vector<16x96xf32> to vector<16x32xf32>
    %231 = vector.extract_strided_slice %229 {offsets = [0, 32], sizes = [16, 32], strides = [1, 1]} : vector<16x96xf32> to vector<16x32xf32>
    %232 = vector.extract_strided_slice %229 {offsets = [0, 64], sizes = [16, 32], strides = [1, 1]} : vector<16x96xf32> to vector<16x32xf32>
    %cst_117 = arith.constant 0.000000e+00 : f32
    %233 = vector.broadcast %cst_117 : f32 to vector<16x32xf32>
    %234 = vector.broadcast %9 : vector<1x32xf32> to vector<16x32xf32>
    %235 = arith.mulf %230, %234 : vector<16x32xf32>
    "tpu.trace_start"() <{level = 10 : i32, message = "nd,md->nm"}> : () -> ()
    %cst_118 = arith.constant dense<0.000000e+00> : vector<16x16xf32>
    %236 = tpu.matmul %235, %231, %cst_118 {dimension_numbers = #tpu.dot_dimension_numbers<[1], [1], [0], [0], [0, 0, 1, 0], [], []>} : vector<16x32xf32>, vector<16x32xf32>, vector<16x16xf32> -> vector<16x16xf32>
    "tpu.trace_stop"() : () -> ()
    %cst_119 = arith.constant 0.353553385 : f32
    %237 = vector.broadcast %cst_119 : f32 to vector<16x16xf32>
    %238 = arith.mulf %236, %237 : vector<16x16xf32>
    %239 = arith.addf %238, %0 : vector<16x16xf32>
    %cst_120 = arith.constant dense<0xFF800000> : vector<16xf32>
    %240 = vector.multi_reduction <maximumf>, %239, %cst_120 [1] : vector<16x16xf32> to vector<16xf32>
    %241 = vector.shape_cast %240 : vector<16xf32> to vector<16x1xf32>
    %242 = vector.broadcast %241 : vector<16x1xf32> to vector<16x16xf32>
    %243 = arith.subf %239, %242 : vector<16x16xf32>
    %244 = math.exp %243 : vector<16x16xf32>
    %cst_121 = arith.constant dense<0.000000e+00> : vector<16xf32>
    %245 = vector.multi_reduction <add>, %244, %cst_121 [1] : vector<16x16xf32> to vector<16xf32>
    %246 = vector.shape_cast %245 : vector<16xf32> to vector<16x1xf32>
    %247 = tpu.reciprocal %246 {approx = true} : vector<16x1xf32> -> vector<16x1xf32>
    %248 = vector.broadcast %247 : vector<16x1xf32> to vector<16x16xf32>
    %249 = arith.mulf %244, %248 : vector<16x16xf32>
    %250 = vector.broadcast %9 : vector<1x32xf32> to vector<16x32xf32>
    %251 = arith.mulf %232, %250 : vector<16x32xf32>
    %cst_122 = arith.constant dense<0.000000e+00> : vector<16x32xf32>
    %252 = tpu.matmul %249, %251, %cst_122 {dimension_numbers = #tpu.dot_dimension_numbers<[1], [0], [0], [1], [0, 0, 1, 1], [], []>} : vector<16x16xf32>, vector<16x32xf32>, vector<16x32xf32> -> vector<16x32xf32>
    %253 = arith.addf %233, %252 : vector<16x32xf32>
    %254 = vector.broadcast %17 : vector<1x32xf32> to vector<16x32xf32>
    %255 = arith.mulf %230, %254 : vector<16x32xf32>
    "tpu.trace_start"() <{level = 10 : i32, message = "nd,md->nm"}> : () -> ()
    %cst_123 = arith.constant dense<0.000000e+00> : vector<16x16xf32>
    %256 = tpu.matmul %255, %231, %cst_123 {dimension_numbers = #tpu.dot_dimension_numbers<[1], [1], [0], [0], [0, 0, 1, 0], [], []>} : vector<16x32xf32>, vector<16x32xf32>, vector<16x16xf32> -> vector<16x16xf32>
    "tpu.trace_stop"() : () -> ()
    %cst_124 = arith.constant 0.353553385 : f32
    %257 = vector.broadcast %cst_124 : f32 to vector<16x16xf32>
    %258 = arith.mulf %256, %257 : vector<16x16xf32>
    %259 = arith.addf %258, %0 : vector<16x16xf32>
    %cst_125 = arith.constant dense<0xFF800000> : vector<16xf32>
    %260 = vector.multi_reduction <maximumf>, %259, %cst_125 [1] : vector<16x16xf32> to vector<16xf32>
    %261 = vector.shape_cast %260 : vector<16xf32> to vector<16x1xf32>
    %262 = vector.broadcast %261 : vector<16x1xf32> to vector<16x16xf32>
    %263 = arith.subf %259, %262 : vector<16x16xf32>
    %264 = math.exp %263 : vector<16x16xf32>
    %cst_126 = arith.constant dense<0.000000e+00> : vector<16xf32>
    %265 = vector.multi_reduction <add>, %264, %cst_126 [1] : vector<16x16xf32> to vector<16xf32>
    %266 = vector.shape_cast %265 : vector<16xf32> to vector<16x1xf32>
    %267 = tpu.reciprocal %266 {approx = true} : vector<16x1xf32> -> vector<16x1xf32>
    %268 = vector.broadcast %267 : vector<16x1xf32> to vector<16x16xf32>
    %269 = arith.mulf %264, %268 : vector<16x16xf32>
    %270 = vector.broadcast %17 : vector<1x32xf32> to vector<16x32xf32>
    %271 = arith.mulf %232, %270 : vector<16x32xf32>
    %cst_127 = arith.constant dense<0.000000e+00> : vector<16x32xf32>
    %272 = tpu.matmul %269, %271, %cst_127 {dimension_numbers = #tpu.dot_dimension_numbers<[1], [0], [0], [1], [0, 0, 1, 1], [], []>} : vector<16x16xf32>, vector<16x32xf32>, vector<16x32xf32> -> vector<16x32xf32>
    %273 = arith.addf %253, %272 : vector<16x32xf32>
    %274 = vector.broadcast %25 : vector<1x32xf32> to vector<16x32xf32>
    %275 = arith.mulf %230, %274 : vector<16x32xf32>
    "tpu.trace_start"() <{level = 10 : i32, message = "nd,md->nm"}> : () -> ()
    %cst_128 = arith.constant dense<0.000000e+00> : vector<16x16xf32>
    %276 = tpu.matmul %275, %231, %cst_128 {dimension_numbers = #tpu.dot_dimension_numbers<[1], [1], [0], [0], [0, 0, 1, 0], [], []>} : vector<16x32xf32>, vector<16x32xf32>, vector<16x16xf32> -> vector<16x16xf32>
    "tpu.trace_stop"() : () -> ()
    %cst_129 = arith.constant 0.353553385 : f32
    %277 = vector.broadcast %cst_129 : f32 to vector<16x16xf32>
    %278 = arith.mulf %276, %277 : vector<16x16xf32>
    %279 = arith.addf %278, %0 : vector<16x16xf32>
    %cst_130 = arith.constant dense<0xFF800000> : vector<16xf32>
    %280 = vector.multi_reduction <maximumf>, %279, %cst_130 [1] : vector<16x16xf32> to vector<16xf32>
    %281 = vector.shape_cast %280 : vector<16xf32> to vector<16x1xf32>
    %282 = vector.broadcast %281 : vector<16x1xf32> to vector<16x16xf32>
    %283 = arith.subf %279, %282 : vector<16x16xf32>
    %284 = math.exp %283 : vector<16x16xf32>
    %cst_131 = arith.constant dense<0.000000e+00> : vector<16xf32>
    %285 = vector.multi_reduction <add>, %284, %cst_131 [1] : vector<16x16xf32> to vector<16xf32>
    %286 = vector.shape_cast %285 : vector<16xf32> to vector<16x1xf32>
    %287 = tpu.reciprocal %286 {approx = true} : vector<16x1xf32> -> vector<16x1xf32>
    %288 = vector.broadcast %287 : vector<16x1xf32> to vector<16x16xf32>
    %289 = arith.mulf %284, %288 : vector<16x16xf32>
    %290 = vector.broadcast %25 : vector<1x32xf32> to vector<16x32xf32>
    %291 = arith.mulf %232, %290 : vector<16x32xf32>
    %cst_132 = arith.constant dense<0.000000e+00> : vector<16x32xf32>
    %292 = tpu.matmul %289, %291, %cst_132 {dimension_numbers = #tpu.dot_dimension_numbers<[1], [0], [0], [1], [0, 0, 1, 1], [], []>} : vector<16x16xf32>, vector<16x32xf32>, vector<16x32xf32> -> vector<16x32xf32>
    %293 = arith.addf %273, %292 : vector<16x32xf32>
    %294 = vector.broadcast %33 : vector<1x32xf32> to vector<16x32xf32>
    %295 = arith.mulf %230, %294 : vector<16x32xf32>
    "tpu.trace_start"() <{level = 10 : i32, message = "nd,md->nm"}> : () -> ()
    %cst_133 = arith.constant dense<0.000000e+00> : vector<16x16xf32>
    %296 = tpu.matmul %295, %231, %cst_133 {dimension_numbers = #tpu.dot_dimension_numbers<[1], [1], [0], [0], [0, 0, 1, 0], [], []>} : vector<16x32xf32>, vector<16x32xf32>, vector<16x16xf32> -> vector<16x16xf32>
    "tpu.trace_stop"() : () -> ()
    %cst_134 = arith.constant 0.353553385 : f32
    %297 = vector.broadcast %cst_134 : f32 to vector<16x16xf32>
    %298 = arith.mulf %296, %297 : vector<16x16xf32>
    %299 = arith.addf %298, %0 : vector<16x16xf32>
    %cst_135 = arith.constant dense<0xFF800000> : vector<16xf32>
    %300 = vector.multi_reduction <maximumf>, %299, %cst_135 [1] : vector<16x16xf32> to vector<16xf32>
    %301 = vector.shape_cast %300 : vector<16xf32> to vector<16x1xf32>
    %302 = vector.broadcast %301 : vector<16x1xf32> to vector<16x16xf32>
    %303 = arith.subf %299, %302 : vector<16x16xf32>
    %304 = math.exp %303 : vector<16x16xf32>
    %cst_136 = arith.constant dense<0.000000e+00> : vector<16xf32>
    %305 = vector.multi_reduction <add>, %304, %cst_136 [1] : vector<16x16xf32> to vector<16xf32>
    %306 = vector.shape_cast %305 : vector<16xf32> to vector<16x1xf32>
    %307 = tpu.reciprocal %306 {approx = true} : vector<16x1xf32> -> vector<16x1xf32>
    %308 = vector.broadcast %307 : vector<16x1xf32> to vector<16x16xf32>
    %309 = arith.mulf %304, %308 : vector<16x16xf32>
    %310 = vector.broadcast %33 : vector<1x32xf32> to vector<16x32xf32>
    %311 = arith.mulf %232, %310 : vector<16x32xf32>
    %cst_137 = arith.constant dense<0.000000e+00> : vector<16x32xf32>
    %312 = tpu.matmul %309, %311, %cst_137 {dimension_numbers = #tpu.dot_dimension_numbers<[1], [0], [0], [1], [0, 0, 1, 1], [], []>} : vector<16x16xf32>, vector<16x32xf32>, vector<16x32xf32> -> vector<16x32xf32>
    %313 = arith.addf %293, %312 : vector<16x32xf32>
    %cst_138 = arith.constant dense<0.000000e+00> : vector<16x32xf32>
    %314 = tpu.matmul %313, %208, %cst_138 {dimension_numbers = #tpu.dot_dimension_numbers<[1], [0], [0], [1], [0, 0, 1, 1], [], []>} : vector<16x32xf32>, vector<32x32xf32>, vector<16x32xf32> -> vector<16x32xf32>
    %315 = vector.broadcast %216 : vector<1x32xf32> to vector<16x32xf32>
    %316 = arith.addf %314, %315 : vector<16x32xf32>
    %317 = arith.addf %202, %316 : vector<16x32xf32>
    %cst_139 = arith.constant dense<0.000000e+00> : vector<16xf32>
    %318 = vector.multi_reduction <add>, %317, %cst_139 [1] : vector<16x32xf32> to vector<16xf32>
    %319 = vector.shape_cast %318 : vector<16xf32> to vector<16x1xf32>
    %cst_140 = arith.constant 3.200000e+01 : f32
    %320 = vector.broadcast %cst_140 : f32 to vector<16x1xf32>
    %321 = arith.divf %319, %320 : vector<16x1xf32>
    %322 = vector.broadcast %321 : vector<16x1xf32> to vector<16x32xf32>
    %323 = arith.subf %317, %322 : vector<16x32xf32>
    %324 = arith.mulf %323, %323 : vector<16x32xf32>
    %cst_141 = arith.constant dense<0.000000e+00> : vector<16xf32>
    %325 = vector.multi_reduction <add>, %324, %cst_141 [1] : vector<16x32xf32> to vector<16xf32>
    %326 = vector.shape_cast %325 : vector<16xf32> to vector<16x1xf32>
    %cst_142 = arith.constant 3.200000e+01 : f32
    %327 = vector.broadcast %cst_142 : f32 to vector<16x1xf32>
    %328 = arith.divf %326, %327 : vector<16x1xf32>
    %329 = vector.broadcast %321 : vector<16x1xf32> to vector<16x32xf32>
    %330 = arith.subf %317, %329 : vector<16x32xf32>
    %cst_143 = arith.constant 9.99999974E-6 : f32
    %331 = vector.broadcast %cst_143 : f32 to vector<16x1xf32>
    %332 = arith.addf %328, %331 : vector<16x1xf32>
    %333 = math.rsqrt %332 : vector<16x1xf32>
    %334 = vector.broadcast %333 : vector<16x1xf32> to vector<16x32xf32>
    %335 = arith.mulf %330, %334 : vector<16x32xf32>
    %336 = vector.broadcast %218 : vector<1x32xf32> to vector<16x32xf32>
    %337 = arith.mulf %335, %336 : vector<16x32xf32>
    %338 = vector.broadcast %220 : vector<1x32xf32> to vector<16x32xf32>
    %339 = arith.addf %337, %338 : vector<16x32xf32>
    %cst_144 = arith.constant dense<0.000000e+00> : vector<16x64xf32>
    %340 = tpu.matmul %339, %210, %cst_144 {dimension_numbers = #tpu.dot_dimension_numbers<[1], [0], [0], [1], [0, 0, 1, 1], [], []>} : vector<16x32xf32>, vector<32x64xf32>, vector<16x64xf32> -> vector<16x64xf32>
    %341 = vector.broadcast %212 : vector<1x64xf32> to vector<16x64xf32>
    %342 = arith.addf %340, %341 : vector<16x64xf32>
    %cst_145 = arith.constant 0.000000e+00 : f32
    %343 = vector.broadcast %cst_145 : f32 to vector<16x64xf32>
    %344 = arith.maximumf %342, %343 : vector<16x64xf32>
    %cst_146 = arith.constant dense<0.000000e+00> : vector<16x32xf32>
    %345 = tpu.matmul %344, %214, %cst_146 {dimension_numbers = #tpu.dot_dimension_numbers<[1], [0], [0], [1], [0, 0, 1, 1], [], []>} : vector<16x64xf32>, vector<64x32xf32>, vector<16x32xf32> -> vector<16x32xf32>
    %346 = vector.broadcast %222 : vector<1x32xf32> to vector<16x32xf32>
    %347 = arith.addf %345, %346 : vector<16x32xf32>
    %348 = arith.addf %339, %347 : vector<16x32xf32>
    %cst_147 = arith.constant dense<0.000000e+00> : vector<16xf32>
    %349 = vector.multi_reduction <add>, %348, %cst_147 [1] : vector<16x32xf32> to vector<16xf32>
    %350 = vector.shape_cast %349 : vector<16xf32> to vector<16x1xf32>
    %cst_148 = arith.constant 3.200000e+01 : f32
    %351 = vector.broadcast %cst_148 : f32 to vector<16x1xf32>
    %352 = arith.divf %350, %351 : vector<16x1xf32>
    %353 = vector.broadcast %352 : vector<16x1xf32> to vector<16x32xf32>
    %354 = arith.subf %348, %353 : vector<16x32xf32>
    %355 = arith.mulf %354, %354 : vector<16x32xf32>
    %cst_149 = arith.constant dense<0.000000e+00> : vector<16xf32>
    %356 = vector.multi_reduction <add>, %355, %cst_149 [1] : vector<16x32xf32> to vector<16xf32>
    %357 = vector.shape_cast %356 : vector<16xf32> to vector<16x1xf32>
    %cst_150 = arith.constant 3.200000e+01 : f32
    %358 = vector.broadcast %cst_150 : f32 to vector<16x1xf32>
    %359 = arith.divf %357, %358 : vector<16x1xf32>
    %360 = vector.broadcast %352 : vector<16x1xf32> to vector<16x32xf32>
    %361 = arith.subf %348, %360 : vector<16x32xf32>
    %cst_151 = arith.constant 9.99999974E-6 : f32
    %362 = vector.broadcast %cst_151 : f32 to vector<16x1xf32>
    %363 = arith.addf %359, %362 : vector<16x1xf32>
    %364 = math.rsqrt %363 : vector<16x1xf32>
    %365 = vector.broadcast %364 : vector<16x1xf32> to vector<16x32xf32>
    %366 = arith.mulf %361, %365 : vector<16x32xf32>
    %367 = vector.broadcast %224 : vector<1x32xf32> to vector<16x32xf32>
    %368 = arith.mulf %366, %367 : vector<16x32xf32>
    %369 = vector.broadcast %226 : vector<1x32xf32> to vector<16x32xf32>
    %370 = arith.addf %368, %369 : vector<16x32xf32>
    %c0_152 = arith.constant 0 : index
    %c0_153 = arith.constant 0 : index
    %371 = vector.load %arg10[%c0_152, %c0_153] : memref<16x32xf32, #tpu.memory_space<vmem>>, vector<16x32xf32>
    tpu.vector_store %arg10[%c0_152, %c0_153], %370 {strides = array<i32>} : memref<16x32xf32, #tpu.memory_space<vmem>>, vector<16x32xf32>,
    return
  }
  func.func @transform_0(%arg0: i32) -> (i32, i32) {
    %c0_i32 = arith.constant 0 : i32
    %c0_i32_0 = arith.constant 0 : i32
    %c0_i32_1 = arith.constant 0 : i32
    return %c0_i32, %c0_i32_0 : i32, i32
  }
  func.func @transform_1(%arg0: i32) -> (i32, i32) {
    %c0_i32 = arith.constant 0 : i32
    %c0_i32_0 = arith.constant 0 : i32
    %c0_i32_1 = arith.constant 0 : i32
    return %c0_i32, %c0_i32_0 : i32, i32
  }
  func.func @transform_2(%arg0: i32) -> (i32, i32, i32) {
    %c0_i32 = arith.constant 0 : i32
    %c0_i32_0 = arith.constant 0 : i32
    %c0_i32_1 = arith.constant 0 : i32
    %c0_i32_2 = arith.constant 0 : i32
    return %c0_i32, %c0_i32_0, %c0_i32_1 : i32, i32, i32
  }
  func.func @transform_3(%arg0: i32) -> (i32, i32, i32) {
    %c0_i32 = arith.constant 0 : i32
    %c0_i32_0 = arith.constant 0 : i32
    %c0_i32_1 = arith.constant 0 : i32
    %c0_i32_2 = arith.constant 0 : i32
    return %c0_i32, %c0_i32_0, %c0_i32_1 : i32, i32, i32
  }
  func.func @transform_4(%arg0: i32) -> (i32, i32, i32) {
    %c0_i32 = arith.constant 0 : i32
    %c0_i32_0 = arith.constant 0 : i32
    %c0_i32_1 = arith.constant 0 : i32
    %c0_i32_2 = arith.constant 0 : i32
    return %c0_i32, %c0_i32_0, %c0_i32_1 : i32, i32, i32
  }
  func.func @transform_5(%arg0: i32) -> (i32, i32, i32) {
    %c0_i32 = arith.constant 0 : i32
    %c0_i32_0 = arith.constant 0 : i32
    %c0_i32_1 = arith.constant 0 : i32
    %c0_i32_2 = arith.constant 0 : i32
    return %c0_i32, %c0_i32_0, %c0_i32_1 : i32, i32, i32
  }
  func.func @transform_6(%arg0: i32) -> (i32, i32, i32) {
    %c0_i32 = arith.constant 0 : i32
    %c0_i32_0 = arith.constant 0 : i32
    %c0_i32_1 = arith.constant 0 : i32
    %c0_i32_2 = arith.constant 0 : i32
    return %c0_i32, %c0_i32_0, %c0_i32_1 : i32, i32, i32
  }
  func.func @transform_7(%arg0: i32) -> (i32, i32, i32) {
    %c0_i32 = arith.constant 0 : i32
    %c0_i32_0 = arith.constant 0 : i32
    %c0_i32_1 = arith.constant 0 : i32
    %c0_i32_2 = arith.constant 0 : i32
    return %c0_i32, %c0_i32_0, %c0_i32_1 : i32, i32, i32
  }
  func.func @transform_8(%arg0: i32) -> (i32, i32, i32) {
    %c0_i32 = arith.constant 0 : i32
    %c0_i32_0 = arith.constant 0 : i32
    %c0_i32_1 = arith.constant 0 : i32
    %c0_i32_2 = arith.constant 0 : i32
    return %c0_i32, %c0_i32_0, %c0_i32_1 : i32, i32, i32
  }
  func.func @transform_9(%arg0: i32) -> (i32, i32) {
    %c0_i32 = arith.constant 0 : i32
    %c0_i32_0 = arith.constant 0 : i32
    %c0_i32_1 = arith.constant 0 : i32
    return %c0_i32, %c0_i32_0 : i32, i32
  }
}

</mosaic_0001>

<bundles_post_ra>
// kernel: decoder_layers_forward.1
= control target key start
LH: loop header
LB: loop body
LE: loop exit
PB: predicated region body
PF: predicated region fallthrough
CT: control target
= control target key end

     0   :  { %vm89_vm0 = vcmask 261120   ;;  %s3990_s0 = inlined_call_operand.vmem [shape: f32[16,32], index: 0, kind: input, shape index: {}]   ;;  %s3991_s1 = inlined_call_operand.vmem [shape: f32[16,16], index: 1, kind: input, shape index: {}]   ;;  %s3992_s2 = inlined_call_operand.vmem [shape: f32[2,32,96], index: 2, kind: input, shape index: {}]   ;;  %s3993_s3 = inlined_call_operand.vmem [shape: f32[2,1,96], index: 3, kind: input, shape index: {}]   ;;  %s3994_s4 = inlined_call_operand.vmem [shape: f32[2,32,32], index: 4, kind: input, shape index: {}]   ;;  %s3995_s5 = inlined_call_operand.vmem [shape: f32[2,32,64], index: 5, kind: input, shape index: {}]   ;;  %s3996_s6 = inlined_call_operand.vmem [shape: f32[2,1,64], index: 6, kind: input, shape index: {}]   ;;  %s3997_s7 = inlined_call_operand.vmem [shape: f32[2,64,32], index: 7, kind: input, shape index: {}]   ;;  %s3998_s8 = inlined_call_operand.vmem [shape: f32[2,6,32], index: 8, kind: input, shape index: {}]   ;;  %s3999_s9 = inlined_call_operand.hbm [shape: f32[16,32], index: 9, kind: output, shape index: {}]  }
   0x1   :  { %v55_v0 = vld [vmem:[%s3992_s2] sm:$0xff]  ;;  %v56_v1 = vld [vmem:[%s3992_s2 + $0x8] sm:$0xff]  ;;  %v57_v2 = vld [vmem:[%s3992_s2 + $0x10] sm:$0xff] }
   0x2   :  { %v3080_v3 = vpack.c.bf16 %v56_v1, %v55_v0  ;;  %v58_v4 = vld [vmem:[%s3992_s2 + $0x18] sm:$0xff]  ;;  %v3483_v5 = vld [vmem:[%s3990_s0] sm:$0xff] }
   0x3   :  { %v3084_v6 = vpack.c.bf16 %v58_v4, %v57_v2  ;;  %2872 = vmatprep.mubr.msk.f32.mxu1 %vm89_vm0, %v3483_v5 }
   0x4   :  { %14 = vsyncpa [#allocation3], 0  ;;  %3081 = vmatprep.subr.bf16.mxu1 %v3080_v3  ;;  %v3490_v7 = vld [vmem:[%s3990_s0 + $0x8] sm:$0xff]  ;;  %v35_v8 = vlaneseq  ;;  %v3412_v10 = vmov 0.0   ;;  %v2636_v13 = vld [vmem:[%s3993_s3] ss:$0 sm:$0xff] }
   0x5   :  { %3083 = vmatpush3.bf16.msra.mxu1 %v3080_v3  ;;  %s3413_s22 = smov 96   ;;  %vm3520_vm11 = vmpackc.low %vm89_vm0, %vm89_vm0  ;;  %v3559_v34 = vld [vmem:[%s3991_s1 + $0x8] sm:$0xff]  ;;  %v3564_v35 = vld [vmem:[%s3991_s1] sm:$0xff]  ;;  %vm268_vm12 = vcmask 130048   ;;  %s3414_s1 = smov 64   ;;  %vm1221_vm13 = vcmask 523264  }
   0x6   :  { %3085 = vmatprep.subr.bf16.mxu1 %v3084_v6  ;;  %v36_v9 = vand.u32 127, %v35_v8  ;;  %s3415_s11 = smov [#allocation2]  }
   0x7   :  { %s2625_s12 = sshll.u32 %s3415_s11, 4  ;;  %s2626_s12 = int_to_ptr.vmem [resolvable:$true] %s2625_s12 }
   0x8   :  { %vm45_vm1 = vcmp.ge.s32.totalorder %v36_v9, 16  ;;  %vm46_vm2 = vcmp.lt.s32.totalorder %v36_v9, 24  ;;  %vm49_vm4 = vcmp.ge.s32.totalorder %v36_v9, 24  ;;  %vm50_vm5 = vcmp.lt.s32.totalorder %v36_v9, 32  ;;  %s3388_s13 = scalar_lea.vmem %s2626_s12, 256  ;;  %p3393_p1 = scmp.lt.s32.totalorder %s2626_s12, %s2626_s12 }
   0x9   :  { %3087 = vmatpush3.bf16.msra.mxu1 %v3084_v6  ;;  %vm47_vm3 = vmand %vm45_vm1, %vm46_vm2  ;;  %vm41_vm7 = vcmp.ge.s32.totalorder %v36_v9, 8  ;;  %vm42_vm8 = vcmp.lt.s32.totalorder %v36_v9, 16  ;;  %vm38_vm9 = vcmp.lt.s32.totalorder %v36_v9, 8  ;;  %p3389_p0 = scmp.ne.s32.totalorder %s2626_s12, %s3388_s13  ;;  %p3394_p2 = scmp.lt.s32.totalorder %s3388_s13, %s3388_s13 }
   0xa   :  { %v3494_v11 = vsel %vm47_vm3, 1.0, %v3412_v10  ;;  %vm51_vm6 = vmand %vm49_vm4, %vm50_vm5  ;;  %v3503_v17 = vsel %vm38_vm9, 1.0, %v3412_v10 }
   0xb   :  { %v3496_v12 = vsel %vm51_vm6, 1.0, %v3412_v10  ;;  %vm43_vm10 = vmand %vm41_vm7, %vm42_vm8  ;;  %p3395_p3 = por %p3394_p2, %p3393_p1 }
   0xc   :  { %2873 = vmatmul.mubr.msk.f32.vlgmr.msra.gmra.mrb[0].mxu1 %vm89_vm0, %v3490_v7  ;;  %v3505_v18 = vsel %vm43_vm10, 1.0, %v3412_v10 }
   0xd   :  { %p3396_p4 = pnand %p3395_p3, %p3389_p0 }
  0xdf   :  { %v2874_v14 = vpop.f32.mrb[0].mxu1 }
  0xe0   :  { %v3501_v15 = vadd.f32 %v2874_v14, %v2636_v13  ;;  %v162_v16 = vpop.f32.mrb[1].mxu1 }
  0xe1   :  { %v3507_v19 = vadd.f32 %v2636_v13, %v162_v16 }
  0xe2   :  { %v172_v28 = vmul.f32 %v3501_v15, %v3503_v17  ;;  %v298_v29 = vmul.f32 %v3501_v15, %v3505_v18  ;;  %v591_v31 = vmul.f32 %v3501_v15, %v3494_v11 }
  0xe3   :  { %v3258_v20 = vpack.i.bf16 %v3501_v15, %v3507_v19  ;;  %v171_v21 = vmul.f32 %v3507_v19, %v3503_v17  ;;  %v297_v22 = vmul.f32 %v3507_v19, %v3505_v18  ;;  %v590_v30 = vmul.f32 %v3507_v19, %v3494_v11 }
  0xe5   :  { %3259 = vrot.lane.b32.xlu0 %v3258_v20, %s3413_s22  ;;  %2879 = vmatprep.mubr.msk.f32.mxu1 %vm89_vm0, %v171_v21 }
  0xe6   :  { %2886 = vmatprep.mubr.msk.f32.mxu0 %vm89_vm0, %v297_v22 }
 0x157   :  { %v3260_v23 = vpop.permute.xlu0 %3259 }
 0x158   :  { %v3262_v24 = vunpack.i.h.bf16 %v3260_v23  ;;  %v3261_v25 = vunpack.i.l.bf16 %v3260_v23 }
 0x15a   :  { %v3524_v27 = vpack.c.bf16 %v3262_v24, %v3261_v25 }
 0x15c   :  { %3090 = vmatprep.subr.msk.bf16.mxu1 %vm3520_vm11, %v3524_v27  ;;  %3096 = vmatprep.subr.msk.bf16.mxu0 %vm3520_vm11, %v3524_v27 }
 0x15d   :  { %3093 = vmatpush3.bf16.xpose.msk.msra.mxu1 %vm3520_vm11, %v3524_v27  ;;  %3099 = vmatpush3.bf16.xpose.msk.msra.mxu0 %vm3520_vm11, %v3524_v27 }
 0x15e   :  { %3110 = vmatprep.subr.msk.bf16.mxu0 %vm3520_vm11, %v3524_v27 }
 0x164   :  { %2880 = vmatmul.mubr.msk.f32.vlgmr.msra.gmra.mrb[2].mxu1 %vm89_vm0, %v172_v28  ;;  %2887 = vmatmul.mubr.msk.f32.vlgmr.msra.gmra.mrb[0].mxu0 %vm89_vm0, %v298_v29 }
 0x165   :  { %3113 = vmatpush3.bf16.xpose.msk.msra.mxu0 %vm3520_vm11, %v3524_v27  ;;  %2907 = vmatprep.mubr.msk.f32.mxu0 %vm89_vm0, %v590_v30 }
 0x16c   :  { %2908 = vmatmul.mubr.msk.f32.vlgmr.msra.gmra.mrb[2].mxu0 %vm89_vm0, %v591_v31 }
 0x237   :  { %v2881_v32 = vpop.f32.mrb[2].mxu1  ;;  %v2888_v33 = vpop.f32.mrb[0].mxu0 }
 0x238   :  { %v265_v36 = vmul.f32 0.35355338, %v2881_v32  ;;  %v381_v37 = vmul.f32 0.35355338, %v2888_v33  ;;  %v255_v38 = vpop.f32.mrb[3].mxu1  ;;  %v371_v39 = vpop.f32.mrb[1].mxu0 }
 0x239   :  { %v380_v40 = vmul.f32 0.35355338, %v371_v39  ;;  %v264_v49 = vmul.f32 0.35355338, %v255_v38 }
 0x23a   :  { %v383_v41 = vadd.f32 %v381_v37, %v3559_v34  ;;  %v267_v44 = vadd.f32 %v265_v36, %v3559_v34 }
 0x23b   :  { %v382_v42 = vadd.f32 %v380_v40, %v3564_v35  ;;  %v266_v51 = vadd.f32 %v264_v49, %v3564_v35 }
 0x23c   :  { %v387_v43 = vsel %vm268_vm12, %v383_v41, -inf  ;;  %v272_v48 = vsel %vm268_vm12, %v267_v44, -inf }
 0x23d   :  { %388 = vmax.xlane.f32.xlu1 %v387_v43  ;;  %v384_v45 = vsel %vm268_vm12, %v382_v42, -inf  ;;  %v269_v53 = vsel %vm268_vm12, %v266_v51, -inf }
 0x23e   :  { %385 = vmax.xlane.f32.xlu0 %v384_v45 }
 0x23f   :  { %v2909_v46 = vpop.f32.mrb[2].mxu0 }
 0x240   :  { %v664_v47 = vpop.f32.mrb[3].mxu0  ;;  %v674_v50 = vmul.f32 0.35355338, %v2909_v46 }
 0x241   :  { %273 = vmax.xlane.f32.xlu1 %v272_v48  ;;  %v673_v52 = vmul.f32 0.35355338, %v664_v47 }
 0x242   :  { %v676_v54 = vadd.f32 %v674_v50, %v3559_v34 }
 0x243   :  { %v675_v56 = vadd.f32 %v673_v52, %v3564_v35 }
 0x244   :  { %v680_v55 = vsel %vm268_vm12, %v676_v54, -inf }
 0x245   :  { %v677_v57 = vsel %vm268_vm12, %v675_v56, -inf }
 0x252   :  { %407 = vrot.lane.b32.xlu1 %v3505_v18, %s3414_s1 }
 0x254   :  { %292 = vrot.lane.b32.xlu0 %v3503_v17, %s3414_s1 }
 0x276   :  { %270 = vmax.xlane.f32.xlu1 %v269_v53 }
 0x27a   :  { %681 = vmax.xlane.f32.xlu1 %v680_v55 }
 0x27e   :  { %678 = vmax.xlane.f32.xlu1 %v677_v57 }
 0x28f   :  { %700 = vrot.lane.b32.xlu1 %v3494_v11, %s3414_s1 }
 0x2ca   :  { %v389_v58 = vpop.xlane.xlu1 %388 }
 0x2cb   :  { %v391_v59 = vsub.f32 %v383_v41, %v389_v58  ;;  %v386_v6 = vpop.xlane.xlu0 %385 }
 0x2cc   :  { %v390_v8 = vsub.f32 %v382_v42, %v386_v6 }
 0x2cd   :  { %v394_v60 = vmul.f32 1.442695, %v391_v59 }
 0x2ce   :  { %v274_v61 = vpop.xlane.xlu1 %273  ;;  %v392_v10 = vmul.f32 1.442695, %v390_v8 }
 0x2cf   :  { %3308 = vpow2.f32 %v394_v60  ;;  %v276_v4 = vsub.f32 %v267_v44, %v274_v61  ;;  %v3605_v41 = vpop.permute.xlu0 %292 }
 0x2d0   :  { %v295_v44 = vmul.f32 %v3605_v41, %v3507_v19  ;;  %v296_v45 = vmul.f32 %v3605_v41, %v3501_v15 }
 0x2d1   :  { %v279_v9 = vmul.f32 1.442695, %v276_v4 }
 0x2d2   :  { %v3584_v62 = vpop.permute.xlu1 %407  ;;  %v3268_v47 = vpack.i.bf16 %v296_v45, %v295_v44 }
 0x2d3   :  { %v410_v63 = vmul.f32 %v3584_v62, %v3507_v19  ;;  %v411_v0 = vmul.f32 %v3584_v62, %v3501_v15  ;;  %3310 = vpow2.f32 %v279_v9 }
 0x2d4   :  { %3312 = vpow2.f32 %v392_v10 }
 0x2d5   :  { %v3263_v1 = vpack.i.bf16 %v411_v0, %v410_v63 }
 0x2d7   :  { %3264 = vrot.lane.b32.xlu1 %v3263_v1, %s3414_s1 }
 0x2d9   :  { %v3309_v2 = vpop.eup %3308 }
 0x2da   :  { %v399_v3 = vsel %vm268_vm12, %v3309_v2, 0.0 }
 0x2db   :  { %400 = vadd.xlane.f32.xlu0 %v399_v3 }
 0x2dd   :  { %v3592_v13 = vpop.eup %3310 }
 0x2de   :  { %v284_v14 = vsel %vm268_vm12, %v3592_v13, 0.0  ;;  %v3313_v16 = vpop.eup %3312 }
 0x2df   :  { %v396_v20 = vsel %vm268_vm12, %v3313_v16, 0.0 }
 0x2fb   :  { %285 = vadd.xlane.f32.xlu1 %v284_v14 }
 0x2ff   :  { %397 = vadd.xlane.f32.xlu1 %v396_v20 }
 0x303   :  { %v271_v21 = vpop.xlane.xlu1 %270 }
 0x304   :  { %v275_v22 = vsub.f32 %v266_v51, %v271_v21 }
 0x306   :  { %v277_v23 = vmul.f32 1.442695, %v275_v22 }
 0x307   :  { %v682_v24 = vpop.xlane.xlu1 %681 }
 0x308   :  { %3314 = vpow2.f32 %v277_v23  ;;  %v684_v25 = vsub.f32 %v676_v54, %v682_v24  ;;  %v796_v24 = vmul.f32 %v3507_v19, %v3496_v12 }
 0x30a   :  { %v687_v28 = vmul.f32 1.442695, %v684_v25 }
 0x30b   :  { %v679_v29 = vpop.xlane.xlu1 %678 }
 0x30c   :  { %3316 = vpow2.f32 %v687_v28  ;;  %v683_v30 = vsub.f32 %v675_v56, %v679_v29 }
 0x30e   :  { %v685_v31 = vmul.f32 1.442695, %v683_v30 }
 0x30f   :  { %v3603_v40 = vpop.permute.xlu1 %700 }
 0x310   :  { %3318 = vpow2.f32 %v685_v31  ;;  %v703_v42 = vmul.f32 %v3603_v40, %v3507_v19  ;;  %v704_v43 = vmul.f32 %v3603_v40, %v3501_v15 }
 0x312   :  { %v3315_v32 = vpop.eup %3314  ;;  %v3273_v46 = vpack.i.bf16 %v704_v43, %v703_v42 }
 0x313   :  { %v281_v33 = vsel %vm268_vm12, %v3315_v32, 0.0 }
 0x314   :  { %282 = vadd.xlane.f32.xlu1 %v281_v33 }
 0x316   :  { %v3598_v36 = vpop.eup %3316 }
 0x317   :  { %v692_v37 = vsel %vm268_vm12, %v3598_v36, 0.0 }
 0x318   :  { %693 = vadd.xlane.f32.xlu0 %v692_v37 }
 0x31a   :  { %v3319_v38 = vpop.eup %3318 }
 0x31b   :  { %v689_v39 = vsel %vm268_vm12, %v3319_v38, 0.0 }
 0x31c   :  { %690 = vadd.xlane.f32.xlu1 %v689_v39 }
 0x32d   :  { %3274 = vrot.lane.b32.xlu1 %v3273_v46, %s3414_s1 }
 0x32e   :  { %3269 = vrot.lane.b32.xlu0 %v3268_v47, %s3414_s1 }
 0x349   :  { %v3265_v48 = vpop.permute.xlu1 %3264 }
 0x34a   :  { %v3267_v49 = vunpack.i.h.bf16 %v3265_v48  ;;  %v3266_v50 = vunpack.i.l.bf16 %v3265_v48 }
 0x34c   :  { %v3100_v51 = vpack.c.bf16 %v3267_v49, %v3266_v50 }
 0x34e   :  { %3101 = vmatprep.subr.bf16.mxu1 %v3100_v51 }
 0x34f   :  { %3103 = vmatpush3.bf16.msra.mxu1 %v3100_v51 }
 0x368   :  { %v401_v53 = vpop.xlane.xlu0 %400 }
 0x369   :  { %3320 = vrcp.f32 %v401_v53  ;;  %v61_v53 = vld [vmem:[%s3994_s4 + $0x8] sm:$0xff] }
 0x373   :  { %v3321_v55 = vpop.eup %3320 }
 0x374   :  { %v405_v58 = vmul.f32 %v3321_v55, %v3309_v2 }
 0x388   :  { %v286_v52 = vpop.xlane.xlu1 %285 }
 0x38c   :  { %v398_v54 = vpop.xlane.xlu1 %397 }
 0x38d   :  { %3322 = vrcp.f32 %v398_v54  ;;  %v62_v54 = vld [vmem:[%s3994_s4 + $0x10] sm:$0xff] }
 0x397   :  { %v3323_v56 = vpop.eup %3322 }
 0x398   :  { %v404_v57 = vmul.f32 %v3323_v56, %v3313_v16 }
 0x39a   :  { %2893 = vmatprep.mubr.msk.f32.mxu1 %vm268_vm12, %v404_v57 }
 0x39b   :  { %2894 = vmatmul.mubr.msk.f32.vlgmr.msra.gmra.mrb[4].mxu1 %vm268_vm12, %v405_v58 }
 0x3a1   :  { %v283_v59 = vpop.xlane.xlu1 %282 }
 0x3a2   :  { %3324 = vrcp.f32 %v283_v59 }
 0x3a3   :  { %3326 = vrcp.f32 %v286_v52  ;;  %v60_v52 = vld [vmem:[%s3994_s4] sm:$0xff] }
 0x3a4   :  { %v3128_v55 = vpack.c.bf16 %v61_v53, %v60_v52 }
 0x3a5   :  { %v694_v60 = vpop.xlane.xlu0 %693 }
 0x3a6   :  { %3129 = vmatprep.subr.bf16.mxu0 %v3128_v55 }
 0x3a7   :  { %3131 = vmatpush3.bf16.msra.mxu0 %v3128_v55 }
 0x3a9   :  { %v3270_v61 = vpop.permute.xlu0 %3269  ;;  %v691_v63 = vpop.xlane.xlu1 %690 }
 0x3aa   :  { %v3272_v0 = vunpack.i.h.bf16 %v3270_v61  ;;  %v3271_v1 = vunpack.i.l.bf16 %v3270_v61  ;;  %3328 = vrcp.f32 %v691_v63 }
 0x3ab   :  { %3330 = vrcp.f32 %v694_v60 }
 0x3ac   :  { %v3325_v3 = vpop.eup %3324  ;;  %v3104_v4 = vpack.c.bf16 %v3272_v0, %v3271_v1 }
 0x3ad   :  { %v3327_v6 = vpop.eup %3326  ;;  %v3275_v8 = vpop.permute.xlu1 %3274  ;;  %v289_v9 = vmul.f32 %v3325_v3, %v3315_v32 }
 0x3ae   :  { %v3277_v2 = vunpack.i.h.bf16 %v3275_v8  ;;  %v3276_v10 = vunpack.i.l.bf16 %v3275_v8  ;;  %3105 = vmatprep.subr.bf16.mxu1 %v3104_v4  ;;  %v290_v14 = vmul.f32 %v3327_v6, %v3592_v13  ;;  %v797_v13 = vmul.f32 %v3501_v15, %v3496_v12  ;;  %v2663_v8 = vld [vmem:[%s3998_s8] ss:$0 sm:$0xff] }
 0x3af   :  { %3107 = vmatpush3.bf16.msra.mxu1 %v3104_v4  ;;  %2900 = vmatprep.mubr.msk.f32.mxu1 %vm268_vm12, %v289_v9 }
 0x3b0   :  { %v3114_v16 = vpack.c.bf16 %v3277_v2, %v3276_v10 }
 0x3b2   :  { %2901 = vmatmul.mubr.msk.f32.vlgmr.msra.gmra.mrb[4].mxu1 %vm268_vm12, %v290_v14  ;;  %3115 = vmatprep.subr.bf16.mxu1 %v3114_v16 }
 0x3b3   :  { %3117 = vmatpush3.bf16.msra.mxu1 %v3114_v16 }
 0x3b4   :  { %v3329_v20 = vpop.eup %3328  ;;  %3120 = vmatprep.subr.msk.bf16.mxu1 %vm3520_vm11, %v3524_v27 }
 0x3b5   :  { %v3331_v21 = vpop.eup %3330  ;;  %v697_v22 = vmul.f32 %v3329_v20, %v3319_v38 }
 0x3b6   :  { %v698_v23 = vmul.f32 %v3331_v21, %v3598_v36 }
 0x3b7   :  { %2914 = vmatprep.mubr.msk.f32.mxu1 %vm268_vm12, %v697_v22 }
 0x3ba   :  { %2915 = vmatmul.mubr.msk.f32.vlgmr.msra.gmra.mrb[4].mxu1 %vm268_vm12, %v698_v23 }
 0x3bb   :  { %2921 = vmatprep.mubr.msk.f32.mxu1 %vm89_vm0, %v796_v24 }
 0x3bc   :  { %3123 = vmatpush3.bf16.xpose.msk.msra.mxu1 %vm3520_vm11, %v3524_v27 }
 0x3c3   :  { %2922 = vmatmul.mubr.msk.f32.vlgmr.msra.gmra.mrb[6].mxu1 %vm89_vm0, %v797_v13 }
 0x496   :  { %v2923_v25 = vpop.f32.mrb[6].mxu1 }
 0x497   :  { %v880_v28 = vmul.f32 0.35355338, %v2923_v25  ;;  %v870_v29 = vpop.f32.mrb[7].mxu1 }
 0x498   :  { %v879_v30 = vmul.f32 0.35355338, %v870_v29 }
 0x499   :  { %v882_v31 = vadd.f32 %v880_v28, %v3559_v34 }
 0x49a   :  { %v881_v32 = vadd.f32 %v879_v30, %v3564_v35 }
 0x49b   :  { %v886_v33 = vsel %vm268_vm12, %v882_v31, -inf }
 0x49c   :  { %887 = vmax.xlane.f32.xlu0 %v886_v33  ;;  %v883_v36 = vsel %vm268_vm12, %v881_v32, -inf  ;;  %v65_v33 = vld [vmem:[%s3995_s5 + $0x8] sm:$0xff] }
 0x49d   :  { %884 = vmax.xlane.f32.xlu1 %v883_v36 }
 0x4b2   :  { %906 = vrot.lane.b32.xlu0 %v3496_v12, %s3414_s1 }
 0x529   :  { %v888_v27 = vpop.xlane.xlu0 %887 }
 0x52a   :  { %v890_v37 = vsub.f32 %v882_v31, %v888_v27  ;;  %v885_v38 = vpop.xlane.xlu1 %884  ;;  %v66_v27 = vld [vmem:[%s3995_s5 + $0x10] sm:$0xff] }
 0x52b   :  { %v889_v39 = vsub.f32 %v881_v32, %v885_v38 }
 0x52c   :  { %v893_v42 = vmul.f32 1.442695, %v890_v37  ;;  %v67_v37 = vld [vmem:[%s3995_s5 + $0x18] sm:$0xff] }
 0x52d   :  { %v891_v43 = vmul.f32 1.442695, %v889_v39  ;;  %v3645_v48 = vpop.permute.xlu0 %906  ;;  %v3140_v38 = vpack.c.bf16 %v67_v37, %v66_v27  ;;  %v69_v39 = vld [vmem:[%s3997_s7] sm:$0xff] }
 0x52e   :  { %3332 = vpow2.f32 %v893_v42  ;;  %v909_v49 = vmul.f32 %v3645_v48, %v3507_v19  ;;  %v910_v50 = vmul.f32 %v3645_v48, %v3501_v15  ;;  %v63_v15 = vld [vmem:[%s3994_s4 + $0x18] sm:$0xff]  ;;  %v70_v42 = vld [vmem:[%s3997_s7 + $0x8] sm:$0xff] }
 0x52f   :  { %3334 = vpow2.f32 %v891_v43  ;;  %v3132_v19 = vpack.c.bf16 %v63_v15, %v62_v54  ;;  %v71_v43 = vld [vmem:[%s3997_s7 + $0x10] sm:$0xff] }
 0x530   :  { %v3278_v51 = vpack.i.bf16 %v910_v50, %v909_v49  ;;  %v74_v49 = vld [vmem:[%s3997_s7 + $0x28] sm:$0xff] }
 0x531   :  { %3133 = vmatprep.subr.bf16.mxu0 %v3132_v19 }
 0x532   :  { %3135 = vmatpush3.bf16.msra.mxu0 %v3132_v19 }
 0x538   :  { %v3333_v44 = vpop.eup %3332 }
 0x539   :  { %v898_v45 = vsel %vm268_vm12, %v3333_v44, 0.0  ;;  %v3335_v46 = vpop.eup %3334 }
 0x53a   :  { %899 = vadd.xlane.f32.xlu1 %v898_v45  ;;  %v895_v47 = vsel %vm268_vm12, %v3335_v46, 0.0  ;;  %v72_v45 = vld [vmem:[%s3997_s7 + $0x18] sm:$0xff] }
 0x53e   :  { %896 = vadd.xlane.f32.xlu1 %v895_v47  ;;  %v73_v47 = vld [vmem:[%s3997_s7 + $0x20] sm:$0xff] }
 0x53f   :  { %v3152_v50 = vpack.c.bf16 %v74_v49, %v73_v47 }
 0x54f   :  { %3279 = vrot.lane.b32.xlu1 %v3278_v51, %s3414_s1 }
 0x5c7   :  { %v900_v56 = vpop.xlane.xlu1 %899 }
 0x5c8   :  { %3336 = vrcp.f32 %v900_v56  ;;  %v2666_v56 = vld [vmem:[%s3998_s8 + $0x1] ss:$0 sm:$0xff] }
 0x5cb   :  { %v897_v57 = vpop.xlane.xlu1 %896 }
 0x5cc   :  { %3338 = vrcp.f32 %v897_v57 }
 0x5cf   :  { %v3280_v58 = vpop.permute.xlu1 %3279 }
 0x5d0   :  { %v3282_v59 = vunpack.i.h.bf16 %v3280_v58  ;;  %v3281_v60 = vunpack.i.l.bf16 %v3280_v58  ;;  %v2667_v58 = vld [vmem:[%s3998_s8 + $0x2] ss:$0 sm:$0xff] }
 0x5d2   :  { %v3124_v61 = vpack.c.bf16 %v3282_v59, %v3281_v60  ;;  %v3337_v63 = vpop.eup %3336 }
 0x5d3   :  { %v904_v3 = vmul.f32 %v3337_v63, %v3333_v44  ;;  %v3144_v44 = vpack.c.bf16 %v70_v42, %v69_v39  ;;  %v2676_v42 = vld [vmem:[%s3992_s2 + $0x20] sm:$0xff] }
 0x5d4   :  { %3125 = vmatprep.subr.bf16.mxu1 %v3124_v61 }
 0x5d5   :  { %3127 = vmatpush3.bf16.msra.mxu1 %v3124_v61 }
 0x5d6   :  { %v3339_v0 = vpop.eup %3338  ;;  %3145 = vmatprep.subr.bf16.mxu1 %v3144_v44 }
 0x5d7   :  { %v903_v1 = vmul.f32 %v3339_v0, %v3335_v46  ;;  %v3148_v46 = vpack.c.bf16 %v72_v45, %v71_v43  ;;  %v2677_v43 = vld [vmem:[%s3992_s2 + $0x28] sm:$0xff]  ;;  %v2678_v45 = vld [vmem:[%s3992_s2 + $0x30] sm:$0xff] }
 0x5d9   :  { %2928 = vmatprep.mubr.msk.f32.mxu1 %vm268_vm12, %v903_v1 }
 0x5da   :  { %2929 = vmatmul.mubr.msk.f32.vlgmr.msra.gmra.mrb[4].mxu1 %vm268_vm12, %v904_v3  ;;  %v75_v3 = vld [vmem:[%s3997_s7 + $0x30] sm:$0xff] }
 0x5db   :  { %3147 = vmatpush3.bf16.msra.mxu1 %v3144_v44  ;;  %v3160_v44 = vpack.c.bf16 %v2677_v43, %v2676_v42 }
 0x5dc   :  { %3149 = vmatprep.subr.bf16.mxu1 %v3148_v46 }
 0x5df   :  { %3151 = vmatpush3.bf16.msra.mxu1 %v3148_v46  ;;  %v2679_v46 = vld [vmem:[%s3992_s2 + $0x38] sm:$0xff] }
 0x5e0   :  { %3153 = vmatprep.subr.bf16.mxu1 %v3152_v50  ;;  %v3164_v47 = vpack.c.bf16 %v2679_v46, %v2678_v45 }
 0x5e3   :  { %3155 = vmatpush3.bf16.msra.mxu1 %v3152_v50 }
 0x6ad   :  { %v2930_v4 = vpop.f32.mrb[4].mxu1 }
 0x6ae   :  { %v991_v6 = vpop.f32.mrb[5].mxu1 }
 0x6af   :  { %2939 = vmatprep.mubr.msk.f32.mxu0 %vm89_vm0, %v991_v6 }
 0x6b0   :  { %2940 = vmatmul.mubr.msk.f32.vlgmr.msra.gmra.mrb[4].mxu0 %vm89_vm0, %v2930_v4  ;;  %v76_v4 = vld [vmem:[%s3997_s7 + $0x38] sm:$0xff] }
 0x6b1   :  { %v3156_v6 = vpack.c.bf16 %v76_v4, %v75_v3 }
 0x6b3   :  { %3157 = vmatprep.subr.bf16.mxu1 %v3156_v6 }
 0x6b4   :  { %3159 = vmatpush3.bf16.msra.mxu1 %v3156_v6 }
 0x783   :  { %v2941_v9 = vpop.f32.mrb[4].mxu0 }
 0x784   :  { %v1084_v2 = vadd.f32 %v2941_v9, %v2663_v8  ;;  %v1078_v10 = vpop.f32.mrb[5].mxu0 }
 0x785   :  { %v1079_v14 = vadd.f32 %v2663_v8, %v1078_v10  ;;  %v2668_v8 = vld [vmem:[%s3996_s6] ss:$0 sm:$0xff] }
 0x786   :  { %v1088_v16 = vadd.f32 %v1084_v2, %v3490_v7 }
 0x787   :  { %v1087_v20 = vadd.f32 %v1079_v14, %v3483_v5  ;;  %v64_v5 = vld [vmem:[%s3995_s5] sm:$0xff] }
 0x788   :  { %v1092_v21 = vsel %vm89_vm0, %v1088_v16, 0.0  ;;  %v3136_v36 = vpack.c.bf16 %v65_v33, %v64_v5 }
 0x789   :  { %1093 = vadd.xlane.f32.xlu1 %v1092_v21  ;;  %v1089_v22 = vsel %vm89_vm0, %v1087_v20, 0.0  ;;  %v2671_v21 = vld [vmem:[%s3998_s8 + $0x3] ss:$0 sm:$0xff] }
 0x78a   :  { %1090 = vadd.xlane.f32.xlu0 %v1089_v22  ;;  %3137 = vmatprep.subr.bf16.mxu0 %v3136_v36 }
 0x78b   :  { %3139 = vmatpush3.bf16.msra.mxu0 %v3136_v36 }
 0x78c   :  { %3141 = vmatprep.subr.bf16.mxu0 %v3140_v38 }
 0x78f   :  { %3143 = vmatpush3.bf16.msra.mxu0 %v3140_v38 }
 0x790   :  { %3161 = vmatprep.subr.bf16.mxu0 %v3160_v44 }
 0x816   :  { %v1094_v23 = vpop.xlane.xlu1 %1093 }
 0x817   :  { %v1097_v24 = vmul.f32 0.03125, %v1094_v23  ;;  %v1091_v13 = vpop.xlane.xlu0 %1090 }
 0x818   :  { %v1096_v25 = vmul.f32 0.03125, %v1091_v13 }
 0x819   :  { %v1099_v28 = vsub.f32 %v1088_v16, %v1097_v24 }
 0x81a   :  { %v1098_v29 = vsub.f32 %v1087_v20, %v1096_v25 }
 0x81b   :  { %v1101_v32 = vmul.f32 %v1099_v28, %v1099_v28 }
 0x81c   :  { %v1100_v30 = vmul.f32 %v1098_v29, %v1098_v29 }
 0x81d   :  { %v1105_v7 = vsel %vm89_vm0, %v1101_v32, 0.0 }
 0x81e   :  { %v1102_v31 = vsel %vm89_vm0, %v1100_v30, 0.0 }
 0x81f   :  { %1103 = vadd.xlane.f32.xlu0 %v1102_v31 }
 0x823   :  { %1106 = vadd.xlane.f32.xlu0 %v1105_v7 }
 0x8ac   :  { %v1104_v51 = vpop.xlane.xlu0 %1103 }
 0x8ad   :  { %v1108_v52 = vmul.f32 0.03125, %v1104_v51 }
 0x8af   :  { %v1110_v53 = vadd.f32 1e-05, %v1108_v52 }
 0x8b0   :  { %v1107_v54 = vpop.xlane.xlu0 %1106 }
 0x8b1   :  { %3340 = vrsqrt.f32 %v1110_v53  ;;  %v1109_v55 = vmul.f32 0.03125, %v1107_v54 }
 0x8b3   :  { %v1111_v15 = vadd.f32 1e-05, %v1109_v55 }
 0x8b5   :  { %3342 = vrsqrt.f32 %v1111_v15  ;;  %v2674_v15 = vld [vmem:[%s3998_s8 + $0x4] ss:$0 sm:$0xff] }
 0x8bb   :  { %v3341_v19 = vpop.eup %3340 }
 0x8bc   :  { %v1114_v57 = vmul.f32 %v3341_v19, %v1098_v29 }
 0x8be   :  { %v1120_v59 = vmul.f32 %v2666_v56, %v1114_v57 }
 0x8bf   :  { %v3343_v60 = vpop.eup %3342 }
 0x8c0   :  { %v1115_v61 = vmul.f32 %v3343_v60, %v1099_v28  ;;  %v1126_v63 = vadd.f32 %v2667_v58, %v1120_v59 }
 0x8c2   :  { %v1121_v0 = vmul.f32 %v2666_v56, %v1115_v61  ;;  %2950 = vmatprep.mubr.msk.f32.mxu0 %vm89_vm0, %v1126_v63 }
 0x8c4   :  { %v1127_v1 = vadd.f32 %v2667_v58, %v1121_v0  ;;  %v2675_v58 = vld [vmem:[%s3998_s8 + $0x5] ss:$0 sm:$0xff]  ;;  %v2704_v0 = vld [vmem:[%s3993_s3 + $0x1] ss:$0 sm:$0xff] }
 0x8c6   :  { %2951 = vmatmul.mubr.msk.f32.vlgmr.msra.gmra.mrb[6].mxu0 %vm89_vm0, %v1127_v1 }
 0x8c7   :  { %3163 = vmatpush3.bf16.msra.mxu0 %v3160_v44 }
 0x8c8   :  { %3165 = vmatprep.subr.bf16.mxu0 %v3164_v47 }
 0x8cb   :  { %3167 = vmatpush3.bf16.msra.mxu0 %v3164_v47 }
 0x999   :  { %v2952_v9 = vpop.f32.mrb[6].mxu0 }
 0x99a   :  { %v1212_v2 = vadd.f32 %v2952_v9, %v2668_v8  ;;  %v1206_v10 = vpop.f32.mrb[7].mxu0 }
 0x99b   :  { %v1207_v14 = vadd.f32 %v2668_v8, %v1206_v10 }
 0x99c   :  { %v1216_v20 = vmax.f32 %v1212_v2, 0.0 }
 0x99d   :  { %v1215_v16 = vmax.f32 %v1207_v14, 0.0 }
 0x99f   :  { %2969 = vmatprep.mubr.msk.f32.mxu1 %vm1221_vm13, %v1215_v16 }
 0x9a0   :  { %2970 = vmatmul.mubr.msk.f32.vlgmr.msra.gmra.mrb[8].mxu1 %vm1221_vm13, %v1216_v20 }
 0xa73   :  { %v2971_v22 = vpop.f32.mrb[8].mxu1 }
 0xa74   :  { %v1300_v23 = vadd.f32 %v2971_v22, %v2671_v21  ;;  %v1294_v24 = vpop.f32.mrb[9].mxu1 }
 0xa75   :  { %v1295_v13 = vadd.f32 %v2671_v21, %v1294_v24 }
 0xa76   :  { %v1304_v25 = vadd.f32 %v1300_v23, %v1127_v1 }
 0xa77   :  { %v1303_v28 = vadd.f32 %v1295_v13, %v1126_v63 }
 0xa78   :  { %v1308_v29 = vsel %vm89_vm0, %v1304_v25, 0.0 }
 0xa79   :  { %1309 = vadd.xlane.f32.xlu1 %v1308_v29  ;;  %v1305_v30 = vsel %vm89_vm0, %v1303_v28, 0.0 }
 0xa7a   :  { %1306 = vadd.xlane.f32.xlu0 %v1305_v30 }
 0xb06   :  { %v1310_v31 = vpop.xlane.xlu1 %1309 }
 0xb07   :  { %v1312_v32 = vmul.f32 0.03125, %v1310_v31  ;;  %v1307_v7 = vpop.xlane.xlu0 %1306 }
 0xb08   :  { %v1311_v5 = vmul.f32 0.03125, %v1307_v7 }
 0xb09   :  { %v1314_v33 = vsub.f32 %v1304_v25, %v1312_v32 }
 0xb0a   :  { %v1313_v36 = vsub.f32 %v1303_v28, %v1311_v5 }
 0xb0b   :  { %v1316_v27 = vmul.f32 %v1314_v33, %v1314_v33 }
 0xb0c   :  { %v1315_v37 = vmul.f32 %v1313_v36, %v1313_v36 }
 0xb0d   :  { %v1320_v38 = vsel %vm89_vm0, %v1316_v27, 0.0 }
 0xb0e   :  { %1321 = vadd.xlane.f32.xlu1 %v1320_v38  ;;  %v1317_v39 = vsel %vm89_vm0, %v1315_v37, 0.0 }
 0xb0f   :  { %1318 = vadd.xlane.f32.xlu0 %v1317_v39 }
 0xb9b   :  { %v1322_v49 = vpop.xlane.xlu1 %1321 }
 0xb9c   :  { %v1324_v50 = vmul.f32 0.03125, %v1322_v49  ;;  %v1319_v51 = vpop.xlane.xlu0 %1318 }
 0xb9d   :  { %v1323_v52 = vmul.f32 0.03125, %v1319_v51 }
 0xb9e   :  { %v1326_v53 = vadd.f32 1e-05, %v1324_v50 }
 0xb9f   :  { %v1325_v54 = vadd.f32 1e-05, %v1323_v52 }
 0xba0   :  { %3344 = vrsqrt.f32 %v1326_v53 }
 0xba1   :  { %3346 = vrsqrt.f32 %v1325_v54 }
 0xbaa   :  { %v3345_v55 = vpop.eup %3344 }
 0xbab   :  { %v3347_v19 = vpop.eup %3346  ;;  %v1330_v56 = vmul.f32 %v3345_v55, %v1314_v33 }
 0xbac   :  { %v1329_v57 = vmul.f32 %v3347_v19, %v1313_v36 }
 0xbad   :  { %v1336_v59 = vmul.f32 %v2674_v15, %v1330_v56 }
 0xbae   :  { %v1335_v60 = vmul.f32 %v2674_v15, %v1329_v57 }
 0xbaf   :  { %v3753_v63 = vadd.f32 %v2675_v58, %v1336_v59 }
 0xbb0   :  { %v3751_v61 = vadd.f32 %v2675_v58, %v1335_v60 }
 0xbb2   :  { %2980 = vmatprep.mubr.msk.f32.mxu0 %vm89_vm0, %v3751_v61 }
 0xbb3   :  { %2981 = vmatmul.mubr.msk.f32.vlgmr.msra.gmra.mrb[8].mxu0 %vm89_vm0, %v3753_v63 }
 0xc86   :  { %v2982_v1 = vpop.f32.mrb[8].mxu0 }
 0xc87   :  { %v1462_v3 = vadd.f32 %v2982_v1, %v2704_v0  ;;  %v1456_v4 = vpop.f32.mrb[9].mxu0 }
 0xc88   :  { %v1457_v6 = vadd.f32 %v2704_v0, %v1456_v4 }
 0xc89   :  { %v3768_v14 = vmul.f32 %v1462_v3, %v3584_v62  ;;  %v3776_v20 = vmul.f32 %v1462_v3, %v3605_v41  ;;  %v3782_v22 = vmul.f32 %v1462_v3, %v3603_v40  ;;  %v3791_v24 = vmul.f32 %v1462_v3, %v3645_v48 }
 0xc8a   :  { %v3283_v8 = vpack.i.bf16 %v1462_v3, %v1457_v6  ;;  %v1465_v9 = vmul.f32 %v1457_v6, %v3503_v17  ;;  %v1586_v2 = vmul.f32 %v1457_v6, %v3505_v18  ;;  %v3765_v10 = vmul.f32 %v1457_v6, %v3584_v62 }
 0xc8b   :  { %v3771_v16 = vmul.f32 %v1457_v6, %v3605_v41  ;;  %v3779_v21 = vmul.f32 %v1457_v6, %v3603_v40  ;;  %v3788_v23 = vmul.f32 %v1457_v6, %v3645_v48  ;;  %v1466_v48 = vmul.f32 %v1462_v3, %v3503_v17 }
 0xc8c   :  { %3284 = vrot.lane.b32.xlu0 %v3283_v8, %s3413_s22  ;;  %2987 = vmatprep.mubr.msk.f32.mxu0 %vm89_vm0, %v1465_v9  ;;  %v3288_v62 = vpack.i.bf16 %v3768_v14, %v3765_v10  ;;  %v1587_v31 = vmul.f32 %v1462_v3, %v3505_v18  ;;  %v1875_v32 = vmul.f32 %v1457_v6, %v3494_v11 }
 0xc8d   :  { %2994 = vmatprep.mubr.msk.f32.mxu1 %vm89_vm0, %v1586_v2  ;;  %v3293_v41 = vpack.i.bf16 %v3776_v20, %v3771_v16  ;;  %v3298_v13 = vpack.i.bf16 %v3782_v22, %v3779_v21  ;;  %v3303_v40 = vpack.i.bf16 %v3791_v24, %v3788_v23  ;;  %v1876_v7 = vmul.f32 %v1462_v3, %v3494_v11 }
 0xc8e   :  { %v2077_v17 = vmul.f32 %v1457_v6, %v3496_v12  ;;  %v2078_v18 = vmul.f32 %v1462_v3, %v3496_v12 }
 0xcfe   :  { %v3285_v25 = vpop.permute.xlu0 %3284 }
 0xcff   :  { %v3287_v28 = vunpack.i.h.bf16 %v3285_v25  ;;  %v3286_v29 = vunpack.i.l.bf16 %v3285_v25 }
 0xd01   :  { %v3168_v30 = vpack.c.bf16 %v3287_v28, %v3286_v29 }
 0xd03   :  { %3170 = vmatprep.subr.msk.bf16.mxu0 %vm3520_vm11, %v3168_v30  ;;  %3176 = vmatprep.subr.msk.bf16.mxu1 %vm3520_vm11, %v3168_v30 }
 0xd04   :  { %3173 = vmatpush3.bf16.xpose.msk.msra.mxu0 %vm3520_vm11, %v3168_v30  ;;  %3179 = vmatpush3.bf16.xpose.msk.msra.mxu1 %vm3520_vm11, %v3168_v30 }
 0xd05   :  { %3190 = vmatprep.subr.msk.bf16.mxu1 %vm3520_vm11, %v3168_v30 }
 0xd0b   :  { %2988 = vmatmul.mubr.msk.f32.vlgmr.msra.gmra.mrb[10].mxu0 %vm89_vm0, %v1466_v48  ;;  %2995 = vmatmul.mubr.msk.f32.vlgmr.msra.gmra.mrb[10].mxu1 %vm89_vm0, %v1587_v31 }
 0xd0c   :  { %3193 = vmatpush3.bf16.xpose.msk.msra.mxu1 %vm3520_vm11, %v3168_v30  ;;  %3015 = vmatprep.mubr.msk.f32.mxu1 %vm89_vm0, %v1875_v32 }
 0xd0d   :  { %3200 = vmatprep.subr.msk.bf16.mxu1 %vm3520_vm11, %v3168_v30 }
 0xd13   :  { %3016 = vmatmul.mubr.msk.f32.vlgmr.msra.gmra.mrb[12].mxu1 %vm89_vm0, %v1876_v7 }
 0xd14   :  { %3203 = vmatpush3.bf16.xpose.msk.msra.mxu1 %vm3520_vm11, %v3168_v30  ;;  %3029 = vmatprep.mubr.msk.f32.mxu1 %vm89_vm0, %v2077_v17 }
 0xd1b   :  { %3030 = vmatmul.mubr.msk.f32.vlgmr.msra.gmra.mrb[14].mxu1 %vm89_vm0, %v2078_v18 }
 0xdde   :  { %v2989_v5 = vpop.f32.mrb[10].mxu0  ;;  %v2996_v33 = vpop.f32.mrb[10].mxu1 }
 0xddf   :  { %v1670_v36 = vmul.f32 0.35355338, %v2996_v33  ;;  %v1549_v27 = vpop.f32.mrb[11].mxu0  ;;  %v1660_v37 = vpop.f32.mrb[11].mxu1  ;;  %v1559_v39 = vmul.f32 0.35355338, %v2989_v5 }
 0xde0   :  { %v1669_v38 = vmul.f32 0.35355338, %v1660_v37  ;;  %v1558_v44 = vmul.f32 0.35355338, %v1549_v27 }
 0xde1   :  { %v1672_v11 = vadd.f32 %v1670_v36, %v3559_v34  ;;  %v1561_v46 = vadd.f32 %v1559_v39, %v3559_v34 }
 0xde2   :  { %v1671_v26 = vadd.f32 %v1669_v38, %v3564_v35  ;;  %v1560_v50 = vadd.f32 %v1558_v44, %v3564_v35 }
 0xde3   :  { %v1676_v42 = vsel %vm268_vm12, %v1672_v11, -inf  ;;  %v1565_v49 = vsel %vm268_vm12, %v1561_v46, -inf }
 0xde4   :  { %1677 = vmax.xlane.f32.xlu1 %v1676_v42  ;;  %v1673_v12 = vsel %vm268_vm12, %v1671_v26, -inf  ;;  %v1562_v54 = vsel %vm268_vm12, %v1560_v50, -inf }
 0xde6   :  { %v3017_v43 = vpop.f32.mrb[12].mxu1 }
 0xde7   :  { %v1949_v45 = vpop.f32.mrb[13].mxu1  ;;  %v1959_v47 = vmul.f32 0.35355338, %v3017_v43 }
 0xde8   :  { %1674 = vmax.xlane.f32.xlu1 %v1673_v12  ;;  %v1958_v52 = vmul.f32 0.35355338, %v1949_v45 }
 0xde9   :  { %v1961_v55 = vadd.f32 %v1959_v47, %v3559_v34 }
 0xdea   :  { %v1960_v58 = vadd.f32 %v1958_v52, %v3564_v35 }
 0xdeb   :  { %v1965_v57 = vsel %vm268_vm12, %v1961_v55, -inf }
 0xdec   :  { %1566 = vmax.xlane.f32.xlu1 %v1565_v49  ;;  %v1962_v60 = vsel %vm268_vm12, %v1960_v58, -inf }
 0xdee   :  { %v3031_v51 = vpop.f32.mrb[14].mxu1 }
 0xdef   :  { %v2151_v53 = vpop.f32.mrb[15].mxu1  ;;  %v2161_v56 = vmul.f32 0.35355338, %v3031_v51 }
 0xdf0   :  { %v2160_v15 = vmul.f32 0.35355338, %v2151_v53  ;;  %1563 = vmax.xlane.f32.xlu1 %v1562_v54 }
 0xdf1   :  { %v2163_v0 = vadd.f32 %v2161_v56, %v3559_v34 }
 0xdf2   :  { %v3837_v19 = vadd.f32 %v2160_v15, %v3564_v35 }
 0xdf3   :  { %v2167_v1 = vsel %vm268_vm12, %v2163_v0, -inf }
 0xdf4   :  { %1966 = vmax.xlane.f32.xlu1 %v1965_v57  ;;  %v2164_v59 = vsel %vm268_vm12, %v3837_v19, -inf }
 0xdf5   :  { %2165 = vmax.xlane.f32.xlu0 %v2164_v59 }
 0xdf8   :  { %1963 = vmax.xlane.f32.xlu1 %v1962_v60 }
 0xdfc   :  { %2168 = vmax.xlane.f32.xlu1 %v2167_v1 }
 0xe0b   :  { %3289 = vrot.lane.b32.xlu0 %v3288_v62, %s3414_s1 }
 0xe0d   :  { %3294 = vrot.lane.b32.xlu1 %v3293_v41, %s3414_s1 }
 0xe0f   :  { %3299 = vrot.lane.b32.xlu0 %v3298_v13, %s3414_s1 }
 0xe71   :  { %v1678_v34 = vpop.xlane.xlu1 %1677 }
 0xe72   :  { %v1680_v35 = vsub.f32 %v1672_v11, %v1678_v34 }
 0xe74   :  { %v1683_v3 = vmul.f32 1.442695, %v1680_v35 }
 0xe75   :  { %v1675_v4 = vpop.xlane.xlu1 %1674 }
 0xe76   :  { %3348 = vpow2.f32 %v1683_v3  ;;  %v1679_v6 = vsub.f32 %v1671_v26, %v1675_v4 }
 0xe78   :  { %v1681_v2 = vmul.f32 1.442695, %v1679_v6 }
 0xe79   :  { %v1567_v8 = vpop.xlane.xlu1 %1566 }
 0xe7a   :  { %v1569_v9 = vsub.f32 %v1561_v46, %v1567_v8 }
 0xe7c   :  { %v1572_v10 = vmul.f32 1.442695, %v1569_v9 }
 0xe7d   :  { %v1564_v14 = vpop.xlane.xlu1 %1563 }
 0xe7e   :  { %3350 = vpow2.f32 %v1572_v10  ;;  %v1568_v62 = vsub.f32 %v1560_v50, %v1564_v14 }
 0xe7f   :  { %3352 = vpow2.f32 %v1681_v2 }
 0xe80   :  { %v3858_v16 = vpop.eup %3348  ;;  %v1570_v20 = vmul.f32 1.442695, %v1568_v62 }
 0xe81   :  { %v1967_v41 = vpop.xlane.xlu1 %1966  ;;  %v1688_v21 = vsel %vm268_vm12, %v3858_v16, 0.0 }
 0xe82   :  { %v1969_v22 = vsub.f32 %v1961_v55, %v1967_v41  ;;  %v2166_v13 = vpop.xlane.xlu0 %2165  ;;  %1689 = vadd.xlane.f32.xlu1 %v1688_v21  ;;  %3354 = vpow2.f32 %v1570_v20  ;;  %v2681_v20 = vld [vmem:[%s3994_s4 + $0x20] sm:$0xff]  ;;  %v2682_v41 = vld [vmem:[%s3994_s4 + $0x28] sm:$0xff] }
 0xe83   :  { %v2170_v27 = vsub.f32 %v3837_v19, %v2166_v13  ;;  %v3208_v13 = vpack.c.bf16 %v2682_v41, %v2681_v20  ;;  %v2696_v20 = vld [vmem:[%s3997_s7 + $0x70] sm:$0xff]  ;;  %v2697_v41 = vld [vmem:[%s3997_s7 + $0x78] sm:$0xff] }
 0xe84   :  { %v1972_v25 = vmul.f32 1.442695, %v1969_v22 }
 0xe85   :  { %v1964_v28 = vpop.xlane.xlu1 %1963  ;;  %v2172_v43 = vmul.f32 1.442695, %v2170_v27 }
 0xe86   :  { %v1968_v29 = vsub.f32 %v1960_v58, %v1964_v28  ;;  %v3290_v30 = vpop.permute.xlu0 %3289  ;;  %3356 = vpow2.f32 %v1972_v25 }
 0xe87   :  { %v3292_v48 = vunpack.i.h.bf16 %v3290_v30  ;;  %v3291_v31 = vunpack.i.l.bf16 %v3290_v30  ;;  %v2683_v30 = vld [vmem:[%s3994_s4 + $0x30] sm:$0xff] }
 0xe88   :  { %v3862_v32 = vpop.eup %3350  ;;  %v1970_v7 = vmul.f32 1.442695, %v1968_v29 }
 0xe89   :  { %v3180_v17 = vpack.c.bf16 %v3292_v48, %v3291_v31  ;;  %v2169_v18 = vpop.xlane.xlu1 %2168  ;;  %v1577_v5 = vsel %vm268_vm12, %v3862_v32, 0.0  ;;  %v3353_v33 = vpop.eup %3352  ;;  %v2684_v48 = vld [vmem:[%s3994_s4 + $0x38] sm:$0xff] }
 0xe8a   :  { %v2171_v36 = vsub.f32 %v2163_v0, %v2169_v18  ;;  %1578 = vadd.xlane.f32.xlu1 %v1577_v5  ;;  %3358 = vpow2.f32 %v1970_v7  ;;  %v1685_v11 = vsel %vm268_vm12, %v3353_v33, 0.0  ;;  %v3300_v56 = vpop.permute.xlu0 %3299  ;;  %v2731_v18 = vld [vmem:[%s3998_s8 + $0x8] ss:$0 sm:$0xff] }
 0xe8b   :  { %3181 = vmatprep.subr.bf16.mxu0 %v3180_v17  ;;  %v3302_v60 = vunpack.i.h.bf16 %v3300_v56  ;;  %v3301_v0 = vunpack.i.l.bf16 %v3300_v56 }
 0xe8c   :  { %v2174_v37 = vmul.f32 1.442695, %v2171_v36  ;;  %3183 = vmatpush3.bf16.msra.mxu0 %v3180_v17  ;;  %v3355_v39 = vpop.eup %3354 }
 0xe8d   :  { %v3295_v38 = vpop.permute.xlu1 %3294  ;;  %v1574_v45 = vsel %vm268_vm12, %v3355_v39, 0.0  ;;  %v3194_v24 = vpack.c.bf16 %v3302_v60, %v3301_v0  ;;  %v2695_v60 = vld [vmem:[%s3997_s7 + $0x68] sm:$0xff] }
 0xe8e   :  { %v3297_v42 = vunpack.i.h.bf16 %v3295_v38  ;;  %v3296_v26 = vunpack.i.l.bf16 %v3295_v38  ;;  %1686 = vadd.xlane.f32.xlu1 %v1685_v11  ;;  %3360 = vpow2.f32 %v2174_v37 }
 0xe8f   :  { %3362 = vpow2.f32 %v2172_v43 }
 0xe90   :  { %v3184_v44 = vpack.c.bf16 %v3297_v42, %v3296_v26  ;;  %v3357_v12 = vpop.eup %3356 }
 0xe91   :  { %v1977_v46 = vsel %vm268_vm12, %v3357_v12, 0.0 }
 0xe92   :  { %1575 = vadd.xlane.f32.xlu1 %v1574_v45  ;;  %3185 = vmatprep.subr.bf16.mxu0 %v3184_v44 }
 0xe94   :  { %v3359_v47 = vpop.eup %3358 }
 0xe95   :  { %v1974_v49 = vsel %vm268_vm12, %v3359_v47, 0.0 }
 0xe96   :  { %1978 = vadd.xlane.f32.xlu1 %v1977_v46 }
 0xe98   :  { %v3871_v50 = vpop.eup %3360 }
 0xe99   :  { %v2179_v51 = vsel %vm268_vm12, %v3871_v50, 0.0  ;;  %v3363_v52 = vpop.eup %3362 }
 0xe9a   :  { %1975 = vadd.xlane.f32.xlu1 %v1974_v49  ;;  %v2176_v53 = vsel %vm268_vm12, %v3363_v52, 0.0 }
 0xe9e   :  { %2180 = vadd.xlane.f32.xlu1 %v2179_v51 }
 0xea2   :  { %2177 = vadd.xlane.f32.xlu1 %v2176_v53  ;;  %v2688_v53 = vld [vmem:[%s3995_s5 + $0x38] sm:$0xff] }
 0xeb3   :  { %3304 = vrot.lane.b32.xlu1 %v3303_v40, %s3414_s1 }
 0xf0f   :  { %v1690_v54 = vpop.xlane.xlu1 %1689 }
 0xf10   :  { %3364 = vrcp.f32 %v1690_v54 }
 0xf17   :  { %v1579_v55 = vpop.xlane.xlu1 %1578 }
 0xf1a   :  { %v3365_v58 = vpop.eup %3364 }
 0xf1b   :  { %v1687_v15 = vpop.xlane.xlu1 %1686  ;;  %v1694_v35 = vmul.f32 %v3365_v58, %v3858_v16 }
 0xf1c   :  { %3366 = vrcp.f32 %v1687_v15  ;;  %v2691_v15 = vld [vmem:[%s3997_s7 + $0x48] sm:$0xff] }
 0xf1f   :  { %v1576_v19 = vpop.xlane.xlu1 %1575 }
 0xf20   :  { %3368 = vrcp.f32 %v1576_v19  ;;  %v2692_v19 = vld [vmem:[%s3997_s7 + $0x50] sm:$0xff] }
 0xf21   :  { %3370 = vrcp.f32 %v1579_v55  ;;  %v2690_v55 = vld [vmem:[%s3997_s7 + $0x40] sm:$0xff] }
 0xf22   :  { %v3224_v56 = vpack.c.bf16 %v2691_v15, %v2690_v55  ;;  %v2743_v15 = vld [vmem:[%s3998_s8 + $0xd] ss:$0 sm:$0xff] }
 0xf23   :  { %v1979_v57 = vpop.xlane.xlu1 %1978 }
 0xf26   :  { %v3367_v59 = vpop.eup %3366 }
 0xf27   :  { %v1976_v1 = vpop.xlane.xlu1 %1975  ;;  %v1693_v34 = vmul.f32 %v3367_v59, %v3353_v33  ;;  %v2694_v59 = vld [vmem:[%s3997_s7 + $0x60] sm:$0xff] }
 0xf28   :  { %3372 = vrcp.f32 %v1976_v1  ;;  %v3232_v0 = vpack.c.bf16 %v2695_v60, %v2694_v59 }
 0xf29   :  { %3001 = vmatprep.mubr.msk.f32.mxu0 %vm268_vm12, %v1693_v34  ;;  %3374 = vrcp.f32 %v1979_v57  ;;  %v2693_v57 = vld [vmem:[%s3997_s7 + $0x58] sm:$0xff] }
 0xf2a   :  { %v3369_v23 = vpop.eup %3368  ;;  %3002 = vmatmul.mubr.msk.f32.vlgmr.msra.gmra.mrb[12].mxu0 %vm268_vm12, %v1694_v35  ;;  %v3228_v58 = vpack.c.bf16 %v2693_v57, %v2692_v19 }
 0xf2b   :  { %3187 = vmatpush3.bf16.msra.mxu0 %v3184_v44  ;;  %v2181_v40 = vpop.xlane.xlu1 %2180  ;;  %v1582_v3 = vmul.f32 %v3369_v23, %v3355_v39  ;;  %v3371_v4 = vpop.eup %3370 }
 0xf2c   :  { %3195 = vmatprep.subr.bf16.mxu0 %v3194_v24  ;;  %v1583_v8 = vmul.f32 %v3371_v4, %v3862_v32  ;;  %v3212_v32 = vpack.c.bf16 %v2684_v48, %v2683_v30  ;;  %v2734_v4 = vld [vmem:[%s3998_s8 + $0x9] ss:$0 sm:$0xff] }
 0xf2d   :  { %3008 = vmatprep.mubr.msk.f32.mxu0 %vm268_vm12, %v1582_v3 }
 0xf2f   :  { %v2178_v6 = vpop.xlane.xlu1 %2177 }
 0xf30   :  { %3376 = vrcp.f32 %v2178_v6 }
 0xf31   :  { %3378 = vrcp.f32 %v2181_v40 }
 0xf32   :  { %v3373_v9 = vpop.eup %3372  ;;  %3009 = vmatmul.mubr.msk.f32.vlgmr.msra.gmra.mrb[12].mxu0 %vm268_vm12, %v1583_v8  ;;  %v2735_v8 = vld [vmem:[%s3998_s8 + $0xa] ss:$0 sm:$0xff] }
 0xf33   :  { %3197 = vmatpush3.bf16.msra.mxu0 %v3194_v24  ;;  %v3305_v2 = vpop.permute.xlu1 %3304  ;;  %v1982_v10 = vmul.f32 %v3373_v9, %v3359_v47  ;;  %v3375_v16 = vpop.eup %3374 }
 0xf34   :  { %v3307_v14 = vunpack.i.h.bf16 %v3305_v2  ;;  %v3306_v62 = vunpack.i.l.bf16 %v3305_v2  ;;  %v1983_v22 = vmul.f32 %v3375_v16, %v3357_v12 }
 0xf35   :  { %3022 = vmatprep.mubr.msk.f32.mxu0 %vm268_vm12, %v1982_v10 }
 0xf36   :  { %v3204_v21 = vpack.c.bf16 %v3307_v14, %v3306_v62 }
 0xf38   :  { %3205 = vmatprep.subr.bf16.mxu0 %v3204_v21 }
 0xf3a   :  { %v3377_v25 = vpop.eup %3376  ;;  %3023 = vmatmul.mubr.msk.f32.vlgmr.msra.gmra.mrb[12].mxu0 %vm268_vm12, %v1983_v22  ;;  %v2736_v22 = vld [vmem:[%s3996_s6 + $0x1] ss:$0 sm:$0xff] }
 0xf3b   :  { %3207 = vmatpush3.bf16.msra.mxu0 %v3204_v21  ;;  %v2184_v28 = vmul.f32 %v3377_v25, %v3363_v52  ;;  %v3379_v29 = vpop.eup %3378  ;;  %v2687_v52 = vld [vmem:[%s3995_s5 + $0x30] sm:$0xff]  ;;  %v3236_v21 = vpack.c.bf16 %v2697_v41, %v2696_v20 }
 0xf3c   :  { %3209 = vmatprep.subr.bf16.mxu0 %v3208_v13  ;;  %v2185_v31 = vmul.f32 %v3379_v29, %v3871_v50  ;;  %v2686_v50 = vld [vmem:[%s3995_s5 + $0x28] sm:$0xff]  ;;  %v3220_v54 = vpack.c.bf16 %v2688_v53, %v2687_v52 }
 0xf3d   :  { %3036 = vmatprep.mubr.msk.f32.mxu0 %vm268_vm12, %v2184_v28  ;;  %v2742_v52 = vld [vmem:[%s3998_s8 + $0xc] ss:$0 sm:$0xff] }
 0xf42   :  { %3037 = vmatmul.mubr.msk.f32.vlgmr.msra.gmra.mrb[12].mxu0 %vm268_vm12, %v2185_v31  ;;  %v2739_v31 = vld [vmem:[%s3998_s8 + $0xb] ss:$0 sm:$0xff] }
 0xf43   :  { %3211 = vmatpush3.bf16.msra.mxu0 %v3208_v13 }
 0xf44   :  { %3213 = vmatprep.subr.bf16.mxu0 %v3212_v32 }
 0xf47   :  { %3215 = vmatpush3.bf16.msra.mxu0 %v3212_v32 }
 0xf48   :  { %3225 = vmatprep.subr.bf16.mxu0 %v3224_v56 }
0x1015   :  { %v3038_v7 = vpop.f32.mrb[12].mxu0 }
0x1016   :  { %v2268_v17 = vpop.f32.mrb[13].mxu0 }
0x1017   :  { %3047 = vmatprep.mubr.msk.f32.mxu0 %vm89_vm0, %v2268_v17 }
0x1018   :  { %3048 = vmatmul.mubr.msk.f32.vlgmr.msra.gmra.mrb[14].mxu0 %vm89_vm0, %v3038_v7 }
0x1019   :  { %3227 = vmatpush3.bf16.msra.mxu0 %v3224_v56 }
0x101a   :  { %3229 = vmatprep.subr.bf16.mxu0 %v3228_v58 }
0x101d   :  { %3231 = vmatpush3.bf16.msra.mxu0 %v3228_v58 }
0x101e   :  { %3233 = vmatprep.subr.bf16.mxu0 %v3232_v0 }
0x1021   :  { %3235 = vmatpush3.bf16.msra.mxu0 %v3232_v0 }
0x1022   :  { %3237 = vmatprep.subr.bf16.mxu0 %v3236_v21 }
0x1025   :  { %3239 = vmatpush3.bf16.msra.mxu0 %v3236_v21 }
0x10eb   :  { %v3049_v5 = vpop.f32.mrb[14].mxu0 }
0x10ec   :  { %v2361_v33 = vadd.f32 %v3049_v5, %v2731_v18  ;;  %v2355_v36 = vpop.f32.mrb[15].mxu0 }
0x10ed   :  { %v2356_v27 = vadd.f32 %v2731_v18, %v2355_v36 }
0x10ee   :  { %v2365_v37 = vadd.f32 %v2361_v33, %v3753_v63 }
0x10ef   :  { %v2364_v38 = vadd.f32 %v2356_v27, %v3751_v61  ;;  %v2685_v61 = vld [vmem:[%s3995_s5 + $0x20] sm:$0xff] }
0x10f0   :  { %v2369_v11 = vsel %vm89_vm0, %v2365_v37, 0.0  ;;  %v3216_v51 = vpack.c.bf16 %v2686_v50, %v2685_v61 }
0x10f1   :  { %2370 = vadd.xlane.f32.xlu1 %v2369_v11  ;;  %v2366_v39 = vsel %vm89_vm0, %v2364_v38, 0.0 }
0x10f2   :  { %2367 = vadd.xlane.f32.xlu0 %v2366_v39  ;;  %3217 = vmatprep.subr.bf16.mxu1 %v3216_v51 }
0x10f3   :  { %3219 = vmatpush3.bf16.msra.mxu1 %v3216_v51 }
0x10f4   :  { %3221 = vmatprep.subr.bf16.mxu1 %v3220_v54 }
0x10f7   :  { %3223 = vmatpush3.bf16.msra.mxu1 %v3220_v54 }
0x117e   :  { %v2371_v42 = vpop.xlane.xlu1 %2370 }
0x117f   :  { %v2373_v26 = vmul.f32 0.03125, %v2371_v42  ;;  %v2368_v43 = vpop.xlane.xlu0 %2367 }
0x1180   :  { %v2372_v44 = vmul.f32 0.03125, %v2368_v43 }
0x1181   :  { %v2375_v45 = vsub.f32 %v2365_v37, %v2373_v26 }
0x1182   :  { %v2374_v12 = vsub.f32 %v2364_v38, %v2372_v44 }
0x1183   :  { %v2377_v49 = vmul.f32 %v2375_v45, %v2375_v45 }
0x1184   :  { %v2376_v46 = vmul.f32 %v2374_v12, %v2374_v12 }
0x1185   :  { %v2381_v63 = vsel %vm89_vm0, %v2377_v49, 0.0 }
0x1186   :  { %v2378_v47 = vsel %vm89_vm0, %v2376_v46, 0.0 }
0x1187   :  { %2379 = vadd.xlane.f32.xlu0 %v2378_v47 }
0x118b   :  { %2382 = vadd.xlane.f32.xlu0 %v2381_v63 }
0x1214   :  { %v2380_v1 = vpop.xlane.xlu0 %2379 }
0x1215   :  { %v2384_v34 = vmul.f32 0.03125, %v2380_v1 }
0x1217   :  { %v2386_v35 = vadd.f32 1e-05, %v2384_v34 }
0x1218   :  { %v2383_v23 = vpop.xlane.xlu0 %2382 }
0x1219   :  { %3380 = vrsqrt.f32 %v2386_v35  ;;  %v2385_v24 = vmul.f32 0.03125, %v2383_v23 }
0x121b   :  { %v2387_v40 = vadd.f32 1e-05, %v2385_v24 }
0x121d   :  { %3382 = vrsqrt.f32 %v2387_v40 }
0x1223   :  { %v3381_v3 = vpop.eup %3380 }
0x1224   :  { %v2390_v6 = vmul.f32 %v3381_v3, %v2374_v12 }
0x1226   :  { %v2396_v9 = vmul.f32 %v2734_v4, %v2390_v6 }
0x1227   :  { %v3383_v2 = vpop.eup %3382 }
0x1228   :  { %v2391_v10 = vmul.f32 %v3383_v2, %v2375_v45  ;;  %v2402_v14 = vadd.f32 %v2735_v8, %v2396_v9 }
0x122a   :  { %v2397_v62 = vmul.f32 %v2734_v4, %v2391_v10  ;;  %3058 = vmatprep.mubr.msk.f32.mxu1 %vm89_vm0, %v2402_v14 }
0x122c   :  { %v2403_v16 = vadd.f32 %v2735_v8, %v2397_v62 }
0x122e   :  { %3059 = vmatmul.mubr.msk.f32.vlgmr.msra.gmra.mrb[16].mxu1 %vm89_vm0, %v2403_v16 }
0x1301   :  { %v3060_v13 = vpop.f32.mrb[16].mxu1 }
0x1302   :  { %v2488_v25 = vadd.f32 %v3060_v13, %v2736_v22  ;;  %v2482_v28 = vpop.f32.mrb[17].mxu1 }
0x1303   :  { %v2483_v29 = vadd.f32 %v2736_v22, %v2482_v28 }
0x1304   :  { %v2492_v48 = vmax.f32 %v2488_v25, 0.0 }
0x1305   :  { %v2491_v30 = vmax.f32 %v2483_v29, 0.0 }
0x1307   :  { %3077 = vmatprep.mubr.msk.f32.mxu0 %vm1221_vm13, %v2491_v30 }
0x1308   :  { %3078 = vmatmul.mubr.msk.f32.vlgmr.msra.gmra.mrb[16].mxu0 %vm1221_vm13, %v2492_v48 }
0x13db   :  { %v3079_v32 = vpop.f32.mrb[16].mxu0 }
0x13dc   :  { %v2575_v7 = vadd.f32 %v3079_v32, %v2739_v31  ;;  %v2569_v17 = vpop.f32.mrb[17].mxu0 }
0x13dd   :  { %v2570_v18 = vadd.f32 %v2739_v31, %v2569_v17 }
0x13de   :  { %v2579_v5 = vadd.f32 %v2575_v7, %v2403_v16 }
0x13df   :  { %v2578_v33 = vadd.f32 %v2570_v18, %v2402_v14 }
0x13e0   :  { %v2583_v36 = vsel %vm89_vm0, %v2579_v5, 0.0 }
0x13e1   :  { %2584 = vadd.xlane.f32.xlu1 %v2583_v36  ;;  %v2580_v27 = vsel %vm89_vm0, %v2578_v33, 0.0 }
0x13e2   :  { %2581 = vadd.xlane.f32.xlu0 %v2580_v27 }
0x146e   :  { %v2585_v37 = vpop.xlane.xlu1 %2584 }
0x146f   :  { %v2587_v38 = vmul.f32 0.03125, %v2585_v37  ;;  %v2582_v11 = vpop.xlane.xlu0 %2581 }
0x1470   :  { %v2586_v39 = vmul.f32 0.03125, %v2582_v11 }
0x1471   :  { %v2589_v42 = vsub.f32 %v2579_v5, %v2587_v38 }
0x1472   :  { %v2588_v26 = vsub.f32 %v2578_v33, %v2586_v39 }
0x1473   :  { %v2591_v43 = vmul.f32 %v2589_v42, %v2589_v42 }
0x1474   :  { %v2590_v44 = vmul.f32 %v2588_v26, %v2588_v26 }
0x1475   :  { %v2595_v45 = vsel %vm89_vm0, %v2591_v43, 0.0 }
0x1476   :  { %2596 = vadd.xlane.f32.xlu1 %v2595_v45  ;;  %v2592_v12 = vsel %vm89_vm0, %v2590_v44, 0.0 }
0x1477   :  { %2593 = vadd.xlane.f32.xlu0 %v2592_v12 }
0x1503   :  { %v2597_v46 = vpop.xlane.xlu1 %2596 }
0x1504   :  { %v2599_v47 = vmul.f32 0.03125, %v2597_v46  ;;  %v2594_v49 = vpop.xlane.xlu0 %2593 }
0x1505   :  { %v2598_v63 = vmul.f32 0.03125, %v2594_v49 }
0x1506   :  { %v2601_v61 = vadd.f32 1e-05, %v2599_v47 }
0x1507   :  { %v2600_v50 = vadd.f32 1e-05, %v2598_v63 }
0x1508   :  { %3384 = vrsqrt.f32 %v2601_v61 }
0x1509   :  { %3386 = vrsqrt.f32 %v2600_v50 }
0x1512   :  { %v3385_v51 = vpop.eup %3384 }
0x1513   :  { %v3387_v53 = vpop.eup %3386  ;;  %v2605_v54 = vmul.f32 %v3385_v51, %v2589_v42 }
0x1514   :  { %v2604_v55 = vmul.f32 %v3387_v53, %v2588_v26 }
0x1515   :  { %v2611_v19 = vmul.f32 %v2742_v52, %v2605_v54 }
0x1516   :  { %v2610_v56 = vmul.f32 %v2742_v52, %v2604_v55 }
0x1517   :  { %v2617_v57 = vadd.f32 %v2743_v15, %v2611_v19 }
0x1518   :  { %v2616_v58 = vadd.f32 %v2743_v15, %v2610_v56 }
0x1519   :  { %2619 = vst.msk [vmem:[#allocation2 + $0x8] sm:$0xff] %vm89_vm0, %v2617_v57 }
0x151a   :  { %2618 = vst.msk [vmem:[#allocation2] sm:$0xff] %vm89_vm0, %v2616_v58 }
0x151b   :  { %3399 = shalt.err (!%p3396_p4)
}
0x151c   :  { %s3400_s15 = scalar_lea.hbm %s3999_s9, 256 }
0x151d   :  { %p3401_p5 = scmp.ne.s32.totalorder %s3999_s9, %s3400_s15  ;;  %p3404_p6 = scmp.lt.u32.totalorder %s3400_s15, %s3999_s9 }
0x151f   :  { %p3406_p7 = pnand %p3404_p6, %p3401_p5 }
0x1521   :  { %3409 = shalt.err (!%p3406_p7)
}
0x1522   :  { %s3416_s18 = smov 128   ;;  %s3417_s3 = smov 8  }
0x1523   :  { %2631 = dma.vmem_to_hbm [thread:$0]  %s2626_s12, 256, %s3999_s9, [#allocation3], %s3416_s18, %s3416_s18, %s3417_s3  }
0x1524   :  { %3410 = dma.done.wait [#allocation3], 256  }
0x1525   :  { %3411 = vsyncadd [#allocation3], 4294967040 }
0x1526   :  { %2635 = vsyncpa [#allocation3], 1 }

</bundles_post_ra>
